<compile_context>
chip_gen: v7x
topology: tpu7x:2x2x1
jax: 0.10.0
libtpu: 0.0.40
codegen_flags: <defaults>
</compile_context>

<pallas_src>
import jax
import jax.numpy as jnp
from jax.experimental import pallas as pl
from jax.experimental.pallas import tpu as pltpu


# ----------------------------- Pallas kernel --------------------------------
def _complete_rnn_kernel(x_ref, h0_ref, wih0_ref, whh_ref, wihr_ref, bsum_ref,
                         wfc_ref, bfc_ref, logits_ref, hfinal_ref,
                         xproj_scr, rnn_out_scr):
    TB, _E = x_ref.shape
    L, B, H = h0_ref.shape
    T = TB // B

    # ---- Prologue: layer-0 input projection for all timesteps at once -------
    # One (T*B, E) x (E, H) matmul; the layer-0 bias sum is folded in here so the per-step
    # layer-0 update is just xproj[t] + h0 @ W_hh0.
    xproj_scr[...] = (
        jnp.dot(x_ref[...], wih0_ref[...], preferred_element_type=jnp.float32)
        + bsum_ref[0])

    # Hoist only the cheap 1-vreg bias broadcasts (JAX does not CSE broadcast_in_dim);
    # weight refs are indexed at each use so the scheduler decides residency.
    biases = [jnp.broadcast_to(bsum_ref[l], (B, H)) for l in range(1, L)]

    # Hidden state carried in registers across the whole sequence.
    h = [h0_ref[l] for l in range(L)]

    # ---- Serial recurrence (T, L small & static -> fully unrolled) ----------
    # TODO(synk): for large T switch this Python unroll to lax.fori_loop(..., unroll=k).
    for t in range(T):
        # Layer 0: input contribution precomputed; only the K=128 recurrent dot remains.
        h[0] = jnp.tanh(
            xproj_scr[pl.ds(t * B, B), :]
            + jnp.dot(h[0], whh_ref[0], preferred_element_type=jnp.float32))
        layer_in = h[0]
        # Layers 1..L-1: split dots (no lane-axis concat), one fused dot+dot+bias expr.
        for l in range(1, L):
            h[l] = jnp.tanh(
                jnp.dot(layer_in, wihr_ref[l - 1], preferred_element_type=jnp.float32)
                + jnp.dot(h[l], whh_ref[l], preferred_element_type=jnp.float32)
                + biases[l - 1])
            layer_in = h[l]
        # Dense (8,128) time-major store; the second tanh is deferred to the epilogue.
        rnn_out_scr[pl.ds(t * B, B), :] = layer_in

    # Final hidden state written exactly once.
    for l in range(L):
        hfinal_ref[l] = h[l]

    # ---- Epilogue: one batched tanh + one (T*B, H) x (H, Opad) FC matmul ----
    fc_in = jnp.tanh(rnn_out_scr[...])
    logits_ref[...] = (
        jnp.dot(fc_in, wfc_ref[...], preferred_element_type=jnp.float32)
        + bfc_ref[...])


# ------------------------------- wrapper -------------------------------------
def complete_rnn_forward(x_tokens, hidden, params):
    """x_tokens: (B, T) int32, hidden: (L, B, H) f32.  Returns ((B*T, O), (L, B, H))."""
    B, T = x_tokens.shape
    L, _, H = hidden.shape
    E = params["embedding"].shape[1]
    O = params["w_fc_t"].shape[1]
    Opad = ((O + 127) // 128) * 128

    # XLA glue: time-major embedding gather (so per-step kernel reads are sublane-dense),
    # bias pre-sum, FC lane-width padding, tiny dummy for the unused L==1 weight slot.
    x_emb = params["embedding"][x_tokens.T].astype(jnp.float32).reshape(T * B, E)
    b_sum = params["b_ih"] + params["b_hh"]                                   # (L, 1, H)
    w_fc_pad = jnp.zeros((H, Opad), jnp.float32).at[:, :O].set(params["w_fc_t"])
    b_fc_pad = jnp.zeros((1, Opad), jnp.float32).at[:, :O].set(params["b_fc"])
    if L > 1:
        w_ih_rest = params["w_ih_rest_t"]                                     # (L-1, H, H)
    else:
        w_ih_rest = jnp.zeros((1, 1, 1), jnp.float32)                         # unused dummy

    full = lambda shape: pl.BlockSpec(shape, lambda i: (0,) * len(shape))

    logits_tm, h_final = pl.pallas_call(
        _complete_rnn_kernel,
        out_shape=(
            jax.ShapeDtypeStruct((T * B, Opad), jnp.float32),
            jax.ShapeDtypeStruct((L, B, H), jnp.float32),
        ),
        grid_spec=pltpu.PrefetchScalarGridSpec(
            num_scalar_prefetch=0,
            grid=(1,),
            in_specs=[
                full((T * B, E)),         # embedded tokens, time-major flattened
                full((L, B, H)),          # h0
                full((E, H)),             # W_ih^T layer 0
                full((L, H, H)),          # W_hh^T all layers
                full(w_ih_rest.shape),    # W_ih^T layers 1..L-1 (or tiny dummy)
                full((L, 1, H)),          # b_ih + b_hh
                full((H, Opad)),          # W_fc^T (lane-padded)
                full((1, Opad)),          # b_fc   (lane-padded)
            ],
            out_specs=[
                full((T * B, Opad)),      # logits, t-major, lane-dense
                full((L, B, H)),          # final hidden
            ],
            scratch_shapes=[
                pltpu.VMEM((T * B, H), jnp.float32),   # precomputed layer-0 projection
                pltpu.VMEM((T * B, H), jnp.float32),   # raw last-layer outputs
            ],
        ),
        compiler_params=pltpu.CompilerParams(
            dimension_semantics=("arbitrary",),
        ),
    )(x_emb, hidden, params["w_ih0_t"], params["w_hh_t"], w_ih_rest, b_sum,
      w_fc_pad, b_fc_pad)

    # Cheap reorder from the kernel's t-major rows to PyTorch's b-major (B*T, O), drop pad.
    logits = (logits_tm.reshape(T, B, Opad).transpose(1, 0, 2)
              .reshape(B * T, Opad)[:, :O])
    return logits, h_final


# ------------------------- pure-JAX reference --------------------------------
def ref_forward(x_tokens, hidden, params):
    B, T = x_tokens.shape
    L, _, H = hidden.shape
    emb = params["embedding"][x_tokens].astype(jnp.float32)   # (B, T, E)
    h = [hidden[l] for l in range(L)]
    outs = []
    for t in range(T):
        layer_in = emb[:, t, :]
        for l in range(L):
            w_in = params["w_ih0_t"] if l == 0 else params["w_ih_rest_t"][l - 1]
            h_new = jnp.tanh(layer_in @ w_in + h[l] @ params["w_hh_t"][l]
                             + params["b_ih"][l] + params["b_hh"][l])
            h[l] = h_new
            layer_in = h_new
        outs.append(layer_in)
    rnn_out = jnp.stack(outs, axis=1)                          # (B, T, H)
    rnn_out = jnp.tanh(rnn_out)                                # intentional double tanh
    logits = rnn_out.reshape(-1, H) @ params["w_fc_t"] + params["b_fc"][0]
    return logits, jnp.stack(h, axis=0)


# --------------------------------- main ---------------------------------------
if __name__ == "__main__":
    # Small, module-consistent shapes (hidden lane-aligned to 128).
    vocab_size = 32
    embedding_dim = 64
    hidden_dim = 128
    output_dim = vocab_size
    num_layers = 2
    batch = 8
    seq = 8

    key = jax.random.PRNGKey(0)
    keys = jax.random.split(key, 10)
    scale = 0.1
    params = {
        "embedding":   scale * jax.random.normal(keys[0], (vocab_size, embedding_dim), jnp.float32),
        "w_ih0_t":     scale * jax.random.normal(keys[1], (embedding_dim, hidden_dim), jnp.float32),
        "w_ih_rest_t": scale * jax.random.normal(keys[2], (max(num_layers - 1, 1), hidden_dim, hidden_dim), jnp.float32),
        "w_hh_t":      scale * jax.random.normal(keys[3], (num_layers, hidden_dim, hidden_dim), jnp.float32),
        "b_ih":        scale * jax.random.normal(keys[4], (num_layers, 1, hidden_dim), jnp.float32),
        "b_hh":        scale * jax.random.normal(keys[5], (num_layers, 1, hidden_dim), jnp.float32),
        "w_fc_t":      scale * jax.random.normal(keys[6], (hidden_dim, output_dim), jnp.float32),
        "b_fc":        scale * jax.random.normal(keys[7], (1, output_dim), jnp.float32),
    }

    x_tokens = jax.random.randint(keys[8], (batch, seq), 0, vocab_size, dtype=jnp.int32)
    hidden0 = jnp.zeros((num_layers, batch, hidden_dim), jnp.float32)  # init_hidden

    fwd = jax.jit(complete_rnn_forward)
    out, h_final = fwd(x_tokens, hidden0, params)
    out = jax.block_until_ready(out)
    h_final = jax.block_until_ready(h_final)

    out_ref, h_ref = ref_forward(x_tokens, hidden0, params)
    assert out.shape == (batch * seq, output_dim)
    assert h_final.shape == (num_layers, batch, hidden_dim)
    assert jnp.allclose(out, out_ref, atol=1e-4, rtol=1e-4), \
        float(jnp.max(jnp.abs(out - out_ref)))
    assert jnp.allclose(h_final, h_ref, atol=1e-4, rtol=1e-4), \
        float(jnp.max(jnp.abs(h_final - h_ref)))

    print("KERNEL_OK")
</pallas_src>

<mosaic_0001>
module attributes {stable_mosaic.version = 11 : i64} {
  func.func @_complete_rnn_kernel(%arg0: i32, %arg1: memref<64x64xf32, #tpu.memory_space<vmem>>, %arg2: memref<2x8x128xf32, #tpu.memory_space<vmem>>, %arg3: memref<64x128xf32, #tpu.memory_space<vmem>>, %arg4: memref<2x128x128xf32, #tpu.memory_space<vmem>>, %arg5: memref<1x128x128xf32, #tpu.memory_space<vmem>>, %arg6: memref<2x1x128xf32, #tpu.memory_space<vmem>>, %arg7: memref<128x128xf32, #tpu.memory_space<vmem>>, %arg8: memref<1x128xf32, #tpu.memory_space<vmem>>, %arg9: memref<64x128xf32, #tpu.memory_space<vmem>>, %arg10: memref<2x8x128xf32, #tpu.memory_space<vmem>>, %arg11: memref<64x128xf32, #tpu.memory_space<vmem>>, %arg12: memref<64x128xf32, #tpu.memory_space<vmem>>) attributes {dimension_semantics = [#tpu.dimension_semantics<arbitrary>], iteration_bounds = array<i64: 1>, scalar_prefetch = 0 : i64, scratch_operands = 2 : i64, tpu.core_type = #tpu.core_type<tc>, window_params = [{pipeline_mode = #tpu.pipeline_mode<synchronous>, transform_indices = @transform_0, window_bounds = array<i64: 64, 64>}, {pipeline_mode = #tpu.pipeline_mode<synchronous>, transform_indices = @transform_1, window_bounds = array<i64: 2, 8, 128>}, {pipeline_mode = #tpu.pipeline_mode<synchronous>, transform_indices = @transform_2, window_bounds = array<i64: 64, 128>}, {pipeline_mode = #tpu.pipeline_mode<synchronous>, transform_indices = @transform_3, window_bounds = array<i64: 2, 128, 128>}, {pipeline_mode = #tpu.pipeline_mode<synchronous>, transform_indices = @transform_4, window_bounds = array<i64: 1, 128, 128>}, {pipeline_mode = #tpu.pipeline_mode<synchronous>, transform_indices = @transform_5, window_bounds = array<i64: 2, 1, 128>}, {pipeline_mode = #tpu.pipeline_mode<synchronous>, transform_indices = @transform_6, window_bounds = array<i64: 128, 128>}, {pipeline_mode = #tpu.pipeline_mode<synchronous>, transform_indices = @transform_7, window_bounds = array<i64: 1, 128>}, {pipeline_mode = #tpu.pipeline_mode<synchronous>, transform_indices = @transform_8, window_bounds = array<i64: 64, 128>}, {pipeline_mode = #tpu.pipeline_mode<synchronous>, transform_indices = @transform_9, window_bounds = array<i64: 2, 8, 128>}]} {
    %c0 = arith.constant 0 : index
    %c0_0 = arith.constant 0 : index
    %0 = vector.load %arg1[%c0, %c0_0] : memref<64x64xf32, #tpu.memory_space<vmem>>, vector<64x64xf32>
    %c0_1 = arith.constant 0 : index
    %c0_2 = arith.constant 0 : index
    %1 = vector.load %arg3[%c0_1, %c0_2] : memref<64x128xf32, #tpu.memory_space<vmem>>, vector<64x128xf32>
    %cst = arith.constant dense<0.000000e+00> : vector<64x128xf32>
    %2 = tpu.matmul %0, %1, %cst {dimension_numbers = #tpu.dot_dimension_numbers<[1], [0], [0], [1], [0, 0, 1, 1], [], []>} : vector<64x64xf32>, vector<64x128xf32>, vector<64x128xf32> -> vector<64x128xf32>
    %c0_3 = arith.constant 0 : index
    %c0_4 = arith.constant 0 : index
    %c0_5 = arith.constant 0 : index
    %3 = vector.load %arg6[%c0_3, %c0_4, %c0_5] : memref<2x1x128xf32, #tpu.memory_space<vmem>>, vector<1x1x128xf32>
    %4 = vector.shape_cast %3 : vector<1x1x128xf32> to vector<1x128xf32>
    %5 = vector.broadcast %4 : vector<1x128xf32> to vector<64x128xf32>
    %6 = arith.addf %2, %5 : vector<64x128xf32>
    %c0_6 = arith.constant 0 : index
    %c0_7 = arith.constant 0 : index
    %7 = vector.load %arg11[%c0_6, %c0_7] : memref<64x128xf32, #tpu.memory_space<vmem>>, vector<64x128xf32>
    tpu.vector_store %arg11[%c0_6, %c0_7], %6 {strides = array<i32>} : memref<64x128xf32, #tpu.memory_space<vmem>>, vector<64x128xf32>,
    %c1 = arith.constant 1 : index
    %c0_8 = arith.constant 0 : index
    %c0_9 = arith.constant 0 : index
    %8 = vector.load %arg6[%c1, %c0_8, %c0_9] : memref<2x1x128xf32, #tpu.memory_space<vmem>>, vector<1x1x128xf32>
    %9 = vector.shape_cast %8 : vector<1x1x128xf32> to vector<1x128xf32>
    %10 = vector.shape_cast %9 : vector<1x128xf32> to vector<1x128xf32>
    %11 = vector.broadcast %10 : vector<1x128xf32> to vector<8x128xf32>
    %c0_10 = arith.constant 0 : index
    %c0_11 = arith.constant 0 : index
    %c0_12 = arith.constant 0 : index
    %12 = vector.load %arg2[%c0_10, %c0_11, %c0_12] : memref<2x8x128xf32, #tpu.memory_space<vmem>>, vector<1x8x128xf32>
    %13 = vector.shape_cast %12 : vector<1x8x128xf32> to vector<8x128xf32>
    %c1_13 = arith.constant 1 : index
    %c0_14 = arith.constant 0 : index
    %c0_15 = arith.constant 0 : index
    %14 = vector.load %arg2[%c1_13, %c0_14, %c0_15] : memref<2x8x128xf32, #tpu.memory_space<vmem>>, vector<1x8x128xf32>
    %15 = vector.shape_cast %14 : vector<1x8x128xf32> to vector<8x128xf32>
    %c0_16 = arith.constant 0 : index
    %c0_17 = arith.constant 0 : index
    %16 = vector.load %arg11[%c0_16, %c0_17] : memref<64x128xf32, #tpu.memory_space<vmem>>, vector<8x128xf32>
    %c0_18 = arith.constant 0 : index
    %c0_19 = arith.constant 0 : index
    %c0_20 = arith.constant 0 : index
    %17 = vector.load %arg4[%c0_18, %c0_19, %c0_20] : memref<2x128x128xf32, #tpu.memory_space<vmem>>, vector<1x128x128xf32>
    %18 = vector.shape_cast %17 : vector<1x128x128xf32> to vector<128x128xf32>
    %cst_21 = arith.constant dense<0.000000e+00> : vector<8x128xf32>
    %19 = tpu.matmul %13, %18, %cst_21 {dimension_numbers = #tpu.dot_dimension_numbers<[1], [0], [0], [1], [0, 0, 1, 1], [], []>} : vector<8x128xf32>, vector<128x128xf32>, vector<8x128xf32> -> vector<8x128xf32>
    %20 = arith.addf %16, %19 : vector<8x128xf32>
    %21 = math.tanh %20 : vector<8x128xf32>
    %c0_22 = arith.constant 0 : index
    %c0_23 = arith.constant 0 : index
    %c0_24 = arith.constant 0 : index
    %22 = vector.load %arg5[%c0_22, %c0_23, %c0_24] : memref<1x128x128xf32, #tpu.memory_space<vmem>>, vector<1x128x128xf32>
    %23 = vector.shape_cast %22 : vector<1x128x128xf32> to vector<128x128xf32>
    %cst_25 = arith.constant dense<0.000000e+00> : vector<8x128xf32>
    %24 = tpu.matmul %21, %23, %cst_25 {dimension_numbers = #tpu.dot_dimension_numbers<[1], [0], [0], [1], [0, 0, 1, 1], [], []>} : vector<8x128xf32>, vector<128x128xf32>, vector<8x128xf32> -> vector<8x128xf32>
    %c1_26 = arith.constant 1 : index
    %c0_27 = arith.constant 0 : index
    %c0_28 = arith.constant 0 : index
    %25 = vector.load %arg4[%c1_26, %c0_27, %c0_28] : memref<2x128x128xf32, #tpu.memory_space<vmem>>, vector<1x128x128xf32>
    %26 = vector.shape_cast %25 : vector<1x128x128xf32> to vector<128x128xf32>
    %cst_29 = arith.constant dense<0.000000e+00> : vector<8x128xf32>
    %27 = tpu.matmul %15, %26, %cst_29 {dimension_numbers = #tpu.dot_dimension_numbers<[1], [0], [0], [1], [0, 0, 1, 1], [], []>} : vector<8x128xf32>, vector<128x128xf32>, vector<8x128xf32> -> vector<8x128xf32>
    %28 = arith.addf %24, %27 : vector<8x128xf32>
    %29 = arith.addf %28, %11 : vector<8x128xf32>
    %30 = math.tanh %29 : vector<8x128xf32>
    %c0_30 = arith.constant 0 : index
    %c0_31 = arith.constant 0 : index
    %31 = vector.load %arg12[%c0_30, %c0_31] : memref<64x128xf32, #tpu.memory_space<vmem>>, vector<8x128xf32>
    tpu.vector_store %arg12[%c0_30, %c0_31], %30 {strides = array<i32>} : memref<64x128xf32, #tpu.memory_space<vmem>>, vector<8x128xf32>,
    %c8 = arith.constant 8 : index
    %c0_32 = arith.constant 0 : index
    %32 = vector.load %arg11[%c8, %c0_32] : memref<64x128xf32, #tpu.memory_space<vmem>>, vector<8x128xf32>
    %c0_33 = arith.constant 0 : index
    %c0_34 = arith.constant 0 : index
    %c0_35 = arith.constant 0 : index
    %33 = vector.load %arg4[%c0_33, %c0_34, %c0_35] : memref<2x128x128xf32, #tpu.memory_space<vmem>>, vector<1x128x128xf32>
    %34 = vector.shape_cast %33 : vector<1x128x128xf32> to vector<128x128xf32>
    %cst_36 = arith.constant dense<0.000000e+00> : vector<8x128xf32>
    %35 = tpu.matmul %21, %34, %cst_36 {dimension_numbers = #tpu.dot_dimension_numbers<[1], [0], [0], [1], [0, 0, 1, 1], [], []>} : vector<8x128xf32>, vector<128x128xf32>, vector<8x128xf32> -> vector<8x128xf32>
    %36 = arith.addf %32, %35 : vector<8x128xf32>
    %37 = math.tanh %36 : vector<8x128xf32>
    %c0_37 = arith.constant 0 : index
    %c0_38 = arith.constant 0 : index
    %c0_39 = arith.constant 0 : index
    %38 = vector.load %arg5[%c0_37, %c0_38, %c0_39] : memref<1x128x128xf32, #tpu.memory_space<vmem>>, vector<1x128x128xf32>
    %39 = vector.shape_cast %38 : vector<1x128x128xf32> to vector<128x128xf32>
    %cst_40 = arith.constant dense<0.000000e+00> : vector<8x128xf32>
    %40 = tpu.matmul %37, %39, %cst_40 {dimension_numbers = #tpu.dot_dimension_numbers<[1], [0], [0], [1], [0, 0, 1, 1], [], []>} : vector<8x128xf32>, vector<128x128xf32>, vector<8x128xf32> -> vector<8x128xf32>
    %c1_41 = arith.constant 1 : index
    %c0_42 = arith.constant 0 : index
    %c0_43 = arith.constant 0 : index
    %41 = vector.load %arg4[%c1_41, %c0_42, %c0_43] : memref<2x128x128xf32, #tpu.memory_space<vmem>>, vector<1x128x128xf32>
    %42 = vector.shape_cast %41 : vector<1x128x128xf32> to vector<128x128xf32>
    %cst_44 = arith.constant dense<0.000000e+00> : vector<8x128xf32>
    %43 = tpu.matmul %30, %42, %cst_44 {dimension_numbers = #tpu.dot_dimension_numbers<[1], [0], [0], [1], [0, 0, 1, 1], [], []>} : vector<8x128xf32>, vector<128x128xf32>, vector<8x128xf32> -> vector<8x128xf32>
    %44 = arith.addf %40, %43 : vector<8x128xf32>
    %45 = arith.addf %44, %11 : vector<8x128xf32>
    %46 = math.tanh %45 : vector<8x128xf32>
    %c8_45 = arith.constant 8 : index
    %c0_46 = arith.constant 0 : index
    %47 = vector.load %arg12[%c8_45, %c0_46] : memref<64x128xf32, #tpu.memory_space<vmem>>, vector<8x128xf32>
    tpu.vector_store %arg12[%c8_45, %c0_46], %46 {strides = array<i32>} : memref<64x128xf32, #tpu.memory_space<vmem>>, vector<8x128xf32>,
    %c16 = arith.constant 16 : index
    %c0_47 = arith.constant 0 : index
    %48 = vector.load %arg11[%c16, %c0_47] : memref<64x128xf32, #tpu.memory_space<vmem>>, vector<8x128xf32>
    %c0_48 = arith.constant 0 : index
    %c0_49 = arith.constant 0 : index
    %c0_50 = arith.constant 0 : index
    %49 = vector.load %arg4[%c0_48, %c0_49, %c0_50] : memref<2x128x128xf32, #tpu.memory_space<vmem>>, vector<1x128x128xf32>
    %50 = vector.shape_cast %49 : vector<1x128x128xf32> to vector<128x128xf32>
    %cst_51 = arith.constant dense<0.000000e+00> : vector<8x128xf32>
    %51 = tpu.matmul %37, %50, %cst_51 {dimension_numbers = #tpu.dot_dimension_numbers<[1], [0], [0], [1], [0, 0, 1, 1], [], []>} : vector<8x128xf32>, vector<128x128xf32>, vector<8x128xf32> -> vector<8x128xf32>
    %52 = arith.addf %48, %51 : vector<8x128xf32>
    %53 = math.tanh %52 : vector<8x128xf32>
    %c0_52 = arith.constant 0 : index
    %c0_53 = arith.constant 0 : index
    %c0_54 = arith.constant 0 : index
    %54 = vector.load %arg5[%c0_52, %c0_53, %c0_54] : memref<1x128x128xf32, #tpu.memory_space<vmem>>, vector<1x128x128xf32>
    %55 = vector.shape_cast %54 : vector<1x128x128xf32> to vector<128x128xf32>
    %cst_55 = arith.constant dense<0.000000e+00> : vector<8x128xf32>
    %56 = tpu.matmul %53, %55, %cst_55 {dimension_numbers = #tpu.dot_dimension_numbers<[1], [0], [0], [1], [0, 0, 1, 1], [], []>} : vector<8x128xf32>, vector<128x128xf32>, vector<8x128xf32> -> vector<8x128xf32>
    %c1_56 = arith.constant 1 : index
    %c0_57 = arith.constant 0 : index
    %c0_58 = arith.constant 0 : index
    %57 = vector.load %arg4[%c1_56, %c0_57, %c0_58] : memref<2x128x128xf32, #tpu.memory_space<vmem>>, vector<1x128x128xf32>
    %58 = vector.shape_cast %57 : vector<1x128x128xf32> to vector<128x128xf32>
    %cst_59 = arith.constant dense<0.000000e+00> : vector<8x128xf32>
    %59 = tpu.matmul %46, %58, %cst_59 {dimension_numbers = #tpu.dot_dimension_numbers<[1], [0], [0], [1], [0, 0, 1, 1], [], []>} : vector<8x128xf32>, vector<128x128xf32>, vector<8x128xf32> -> vector<8x128xf32>
    %60 = arith.addf %56, %59 : vector<8x128xf32>
    %61 = arith.addf %60, %11 : vector<8x128xf32>
    %62 = math.tanh %61 : vector<8x128xf32>
    %c16_60 = arith.constant 16 : index
    %c0_61 = arith.constant 0 : index
    %63 = vector.load %arg12[%c16_60, %c0_61] : memref<64x128xf32, #tpu.memory_space<vmem>>, vector<8x128xf32>
    tpu.vector_store %arg12[%c16_60, %c0_61], %62 {strides = array<i32>} : memref<64x128xf32, #tpu.memory_space<vmem>>, vector<8x128xf32>,
    %c24 = arith.constant 24 : index
    %c0_62 = arith.constant 0 : index
    %64 = vector.load %arg11[%c24, %c0_62] : memref<64x128xf32, #tpu.memory_space<vmem>>, vector<8x128xf32>
    %c0_63 = arith.constant 0 : index
    %c0_64 = arith.constant 0 : index
    %c0_65 = arith.constant 0 : index
    %65 = vector.load %arg4[%c0_63, %c0_64, %c0_65] : memref<2x128x128xf32, #tpu.memory_space<vmem>>, vector<1x128x128xf32>
    %66 = vector.shape_cast %65 : vector<1x128x128xf32> to vector<128x128xf32>
    %cst_66 = arith.constant dense<0.000000e+00> : vector<8x128xf32>
    %67 = tpu.matmul %53, %66, %cst_66 {dimension_numbers = #tpu.dot_dimension_numbers<[1], [0], [0], [1], [0, 0, 1, 1], [], []>} : vector<8x128xf32>, vector<128x128xf32>, vector<8x128xf32> -> vector<8x128xf32>
    %68 = arith.addf %64, %67 : vector<8x128xf32>
    %69 = math.tanh %68 : vector<8x128xf32>
    %c0_67 = arith.constant 0 : index
    %c0_68 = arith.constant 0 : index
    %c0_69 = arith.constant 0 : index
    %70 = vector.load %arg5[%c0_67, %c0_68, %c0_69] : memref<1x128x128xf32, #tpu.memory_space<vmem>>, vector<1x128x128xf32>
    %71 = vector.shape_cast %70 : vector<1x128x128xf32> to vector<128x128xf32>
    %cst_70 = arith.constant dense<0.000000e+00> : vector<8x128xf32>
    %72 = tpu.matmul %69, %71, %cst_70 {dimension_numbers = #tpu.dot_dimension_numbers<[1], [0], [0], [1], [0, 0, 1, 1], [], []>} : vector<8x128xf32>, vector<128x128xf32>, vector<8x128xf32> -> vector<8x128xf32>
    %c1_71 = arith.constant 1 : index
    %c0_72 = arith.constant 0 : index
    %c0_73 = arith.constant 0 : index
    %73 = vector.load %arg4[%c1_71, %c0_72, %c0_73] : memref<2x128x128xf32, #tpu.memory_space<vmem>>, vector<1x128x128xf32>
    %74 = vector.shape_cast %73 : vector<1x128x128xf32> to vector<128x128xf32>
    %cst_74 = arith.constant dense<0.000000e+00> : vector<8x128xf32>
    %75 = tpu.matmul %62, %74, %cst_74 {dimension_numbers = #tpu.dot_dimension_numbers<[1], [0], [0], [1], [0, 0, 1, 1], [], []>} : vector<8x128xf32>, vector<128x128xf32>, vector<8x128xf32> -> vector<8x128xf32>
    %76 = arith.addf %72, %75 : vector<8x128xf32>
    %77 = arith.addf %76, %11 : vector<8x128xf32>
    %78 = math.tanh %77 : vector<8x128xf32>
    %c24_75 = arith.constant 24 : index
    %c0_76 = arith.constant 0 : index
    %79 = vector.load %arg12[%c24_75, %c0_76] : memref<64x128xf32, #tpu.memory_space<vmem>>, vector<8x128xf32>
    tpu.vector_store %arg12[%c24_75, %c0_76], %78 {strides = array<i32>} : memref<64x128xf32, #tpu.memory_space<vmem>>, vector<8x128xf32>,
    %c32 = arith.constant 32 : index
    %c0_77 = arith.constant 0 : index
    %80 = vector.load %arg11[%c32, %c0_77] : memref<64x128xf32, #tpu.memory_space<vmem>>, vector<8x128xf32>
    %c0_78 = arith.constant 0 : index
    %c0_79 = arith.constant 0 : index
    %c0_80 = arith.constant 0 : index
    %81 = vector.load %arg4[%c0_78, %c0_79, %c0_80] : memref<2x128x128xf32, #tpu.memory_space<vmem>>, vector<1x128x128xf32>
    %82 = vector.shape_cast %81 : vector<1x128x128xf32> to vector<128x128xf32>
    %cst_81 = arith.constant dense<0.000000e+00> : vector<8x128xf32>
    %83 = tpu.matmul %69, %82, %cst_81 {dimension_numbers = #tpu.dot_dimension_numbers<[1], [0], [0], [1], [0, 0, 1, 1], [], []>} : vector<8x128xf32>, vector<128x128xf32>, vector<8x128xf32> -> vector<8x128xf32>
    %84 = arith.addf %80, %83 : vector<8x128xf32>
    %85 = math.tanh %84 : vector<8x128xf32>
    %c0_82 = arith.constant 0 : index
    %c0_83 = arith.constant 0 : index
    %c0_84 = arith.constant 0 : index
    %86 = vector.load %arg5[%c0_82, %c0_83, %c0_84] : memref<1x128x128xf32, #tpu.memory_space<vmem>>, vector<1x128x128xf32>
    %87 = vector.shape_cast %86 : vector<1x128x128xf32> to vector<128x128xf32>
    %cst_85 = arith.constant dense<0.000000e+00> : vector<8x128xf32>
    %88 = tpu.matmul %85, %87, %cst_85 {dimension_numbers = #tpu.dot_dimension_numbers<[1], [0], [0], [1], [0, 0, 1, 1], [], []>} : vector<8x128xf32>, vector<128x128xf32>, vector<8x128xf32> -> vector<8x128xf32>
    %c1_86 = arith.constant 1 : index
    %c0_87 = arith.constant 0 : index
    %c0_88 = arith.constant 0 : index
    %89 = vector.load %arg4[%c1_86, %c0_87, %c0_88] : memref<2x128x128xf32, #tpu.memory_space<vmem>>, vector<1x128x128xf32>
    %90 = vector.shape_cast %89 : vector<1x128x128xf32> to vector<128x128xf32>
    %cst_89 = arith.constant dense<0.000000e+00> : vector<8x128xf32>
    %91 = tpu.matmul %78, %90, %cst_89 {dimension_numbers = #tpu.dot_dimension_numbers<[1], [0], [0], [1], [0, 0, 1, 1], [], []>} : vector<8x128xf32>, vector<128x128xf32>, vector<8x128xf32> -> vector<8x128xf32>
    %92 = arith.addf %88, %91 : vector<8x128xf32>
    %93 = arith.addf %92, %11 : vector<8x128xf32>
    %94 = math.tanh %93 : vector<8x128xf32>
    %c32_90 = arith.constant 32 : index
    %c0_91 = arith.constant 0 : index
    %95 = vector.load %arg12[%c32_90, %c0_91] : memref<64x128xf32, #tpu.memory_space<vmem>>, vector<8x128xf32>
    tpu.vector_store %arg12[%c32_90, %c0_91], %94 {strides = array<i32>} : memref<64x128xf32, #tpu.memory_space<vmem>>, vector<8x128xf32>,
    %c40 = arith.constant 40 : index
    %c0_92 = arith.constant 0 : index
    %96 = vector.load %arg11[%c40, %c0_92] : memref<64x128xf32, #tpu.memory_space<vmem>>, vector<8x128xf32>
    %c0_93 = arith.constant 0 : index
    %c0_94 = arith.constant 0 : index
    %c0_95 = arith.constant 0 : index
    %97 = vector.load %arg4[%c0_93, %c0_94, %c0_95] : memref<2x128x128xf32, #tpu.memory_space<vmem>>, vector<1x128x128xf32>
    %98 = vector.shape_cast %97 : vector<1x128x128xf32> to vector<128x128xf32>
    %cst_96 = arith.constant dense<0.000000e+00> : vector<8x128xf32>
    %99 = tpu.matmul %85, %98, %cst_96 {dimension_numbers = #tpu.dot_dimension_numbers<[1], [0], [0], [1], [0, 0, 1, 1], [], []>} : vector<8x128xf32>, vector<128x128xf32>, vector<8x128xf32> -> vector<8x128xf32>
    %100 = arith.addf %96, %99 : vector<8x128xf32>
    %101 = math.tanh %100 : vector<8x128xf32>
    %c0_97 = arith.constant 0 : index
    %c0_98 = arith.constant 0 : index
    %c0_99 = arith.constant 0 : index
    %102 = vector.load %arg5[%c0_97, %c0_98, %c0_99] : memref<1x128x128xf32, #tpu.memory_space<vmem>>, vector<1x128x128xf32>
    %103 = vector.shape_cast %102 : vector<1x128x128xf32> to vector<128x128xf32>
    %cst_100 = arith.constant dense<0.000000e+00> : vector<8x128xf32>
    %104 = tpu.matmul %101, %103, %cst_100 {dimension_numbers = #tpu.dot_dimension_numbers<[1], [0], [0], [1], [0, 0, 1, 1], [], []>} : vector<8x128xf32>, vector<128x128xf32>, vector<8x128xf32> -> vector<8x128xf32>
    %c1_101 = arith.constant 1 : index
    %c0_102 = arith.constant 0 : index
    %c0_103 = arith.constant 0 : index
    %105 = vector.load %arg4[%c1_101, %c0_102, %c0_103] : memref<2x128x128xf32, #tpu.memory_space<vmem>>, vector<1x128x128xf32>
    %106 = vector.shape_cast %105 : vector<1x128x128xf32> to vector<128x128xf32>
    %cst_104 = arith.constant dense<0.000000e+00> : vector<8x128xf32>
    %107 = tpu.matmul %94, %106, %cst_104 {dimension_numbers = #tpu.dot_dimension_numbers<[1], [0], [0], [1], [0, 0, 1, 1], [], []>} : vector<8x128xf32>, vector<128x128xf32>, vector<8x128xf32> -> vector<8x128xf32>
    %108 = arith.addf %104, %107 : vector<8x128xf32>
    %109 = arith.addf %108, %11 : vector<8x128xf32>
    %110 = math.tanh %109 : vector<8x128xf32>
    %c40_105 = arith.constant 40 : index
    %c0_106 = arith.constant 0 : index
    %111 = vector.load %arg12[%c40_105, %c0_106] : memref<64x128xf32, #tpu.memory_space<vmem>>, vector<8x128xf32>
    tpu.vector_store %arg12[%c40_105, %c0_106], %110 {strides = array<i32>} : memref<64x128xf32, #tpu.memory_space<vmem>>, vector<8x128xf32>,
    %c48 = arith.constant 48 : index
    %c0_107 = arith.constant 0 : index
    %112 = vector.load %arg11[%c48, %c0_107] : memref<64x128xf32, #tpu.memory_space<vmem>>, vector<8x128xf32>
    %c0_108 = arith.constant 0 : index
    %c0_109 = arith.constant 0 : index
    %c0_110 = arith.constant 0 : index
    %113 = vector.load %arg4[%c0_108, %c0_109, %c0_110] : memref<2x128x128xf32, #tpu.memory_space<vmem>>, vector<1x128x128xf32>
    %114 = vector.shape_cast %113 : vector<1x128x128xf32> to vector<128x128xf32>
    %cst_111 = arith.constant dense<0.000000e+00> : vector<8x128xf32>
    %115 = tpu.matmul %101, %114, %cst_111 {dimension_numbers = #tpu.dot_dimension_numbers<[1], [0], [0], [1], [0, 0, 1, 1], [], []>} : vector<8x128xf32>, vector<128x128xf32>, vector<8x128xf32> -> vector<8x128xf32>
    %116 = arith.addf %112, %115 : vector<8x128xf32>
    %117 = math.tanh %116 : vector<8x128xf32>
    %c0_112 = arith.constant 0 : index
    %c0_113 = arith.constant 0 : index
    %c0_114 = arith.constant 0 : index
    %118 = vector.load %arg5[%c0_112, %c0_113, %c0_114] : memref<1x128x128xf32, #tpu.memory_space<vmem>>, vector<1x128x128xf32>
    %119 = vector.shape_cast %118 : vector<1x128x128xf32> to vector<128x128xf32>
    %cst_115 = arith.constant dense<0.000000e+00> : vector<8x128xf32>
    %120 = tpu.matmul %117, %119, %cst_115 {dimension_numbers = #tpu.dot_dimension_numbers<[1], [0], [0], [1], [0, 0, 1, 1], [], []>} : vector<8x128xf32>, vector<128x128xf32>, vector<8x128xf32> -> vector<8x128xf32>
    %c1_116 = arith.constant 1 : index
    %c0_117 = arith.constant 0 : index
    %c0_118 = arith.constant 0 : index
    %121 = vector.load %arg4[%c1_116, %c0_117, %c0_118] : memref<2x128x128xf32, #tpu.memory_space<vmem>>, vector<1x128x128xf32>
    %122 = vector.shape_cast %121 : vector<1x128x128xf32> to vector<128x128xf32>
    %cst_119 = arith.constant dense<0.000000e+00> : vector<8x128xf32>
    %123 = tpu.matmul %110, %122, %cst_119 {dimension_numbers = #tpu.dot_dimension_numbers<[1], [0], [0], [1], [0, 0, 1, 1], [], []>} : vector<8x128xf32>, vector<128x128xf32>, vector<8x128xf32> -> vector<8x128xf32>
    %124 = arith.addf %120, %123 : vector<8x128xf32>
    %125 = arith.addf %124, %11 : vector<8x128xf32>
    %126 = math.tanh %125 : vector<8x128xf32>
    %c48_120 = arith.constant 48 : index
    %c0_121 = arith.constant 0 : index
    %127 = vector.load %arg12[%c48_120, %c0_121] : memref<64x128xf32, #tpu.memory_space<vmem>>, vector<8x128xf32>
    tpu.vector_store %arg12[%c48_120, %c0_121], %126 {strides = array<i32>} : memref<64x128xf32, #tpu.memory_space<vmem>>, vector<8x128xf32>,
    %c56 = arith.constant 56 : index
    %c0_122 = arith.constant 0 : index
    %128 = vector.load %arg11[%c56, %c0_122] : memref<64x128xf32, #tpu.memory_space<vmem>>, vector<8x128xf32>
    %c0_123 = arith.constant 0 : index
    %c0_124 = arith.constant 0 : index
    %c0_125 = arith.constant 0 : index
    %129 = vector.load %arg4[%c0_123, %c0_124, %c0_125] : memref<2x128x128xf32, #tpu.memory_space<vmem>>, vector<1x128x128xf32>
    %130 = vector.shape_cast %129 : vector<1x128x128xf32> to vector<128x128xf32>
    %cst_126 = arith.constant dense<0.000000e+00> : vector<8x128xf32>
    %131 = tpu.matmul %117, %130, %cst_126 {dimension_numbers = #tpu.dot_dimension_numbers<[1], [0], [0], [1], [0, 0, 1, 1], [], []>} : vector<8x128xf32>, vector<128x128xf32>, vector<8x128xf32> -> vector<8x128xf32>
    %132 = arith.addf %128, %131 : vector<8x128xf32>
    %133 = math.tanh %132 : vector<8x128xf32>
    %c0_127 = arith.constant 0 : index
    %c0_128 = arith.constant 0 : index
    %c0_129 = arith.constant 0 : index
    %134 = vector.load %arg5[%c0_127, %c0_128, %c0_129] : memref<1x128x128xf32, #tpu.memory_space<vmem>>, vector<1x128x128xf32>
    %135 = vector.shape_cast %134 : vector<1x128x128xf32> to vector<128x128xf32>
    %cst_130 = arith.constant dense<0.000000e+00> : vector<8x128xf32>
    %136 = tpu.matmul %133, %135, %cst_130 {dimension_numbers = #tpu.dot_dimension_numbers<[1], [0], [0], [1], [0, 0, 1, 1], [], []>} : vector<8x128xf32>, vector<128x128xf32>, vector<8x128xf32> -> vector<8x128xf32>
    %c1_131 = arith.constant 1 : index
    %c0_132 = arith.constant 0 : index
    %c0_133 = arith.constant 0 : index
    %137 = vector.load %arg4[%c1_131, %c0_132, %c0_133] : memref<2x128x128xf32, #tpu.memory_space<vmem>>, vector<1x128x128xf32>
    %138 = vector.shape_cast %137 : vector<1x128x128xf32> to vector<128x128xf32>
    %cst_134 = arith.constant dense<0.000000e+00> : vector<8x128xf32>
    %139 = tpu.matmul %126, %138, %cst_134 {dimension_numbers = #tpu.dot_dimension_numbers<[1], [0], [0], [1], [0, 0, 1, 1], [], []>} : vector<8x128xf32>, vector<128x128xf32>, vector<8x128xf32> -> vector<8x128xf32>
    %140 = arith.addf %136, %139 : vector<8x128xf32>
    %141 = arith.addf %140, %11 : vector<8x128xf32>
    %142 = math.tanh %141 : vector<8x128xf32>
    %c56_135 = arith.constant 56 : index
    %c0_136 = arith.constant 0 : index
    %143 = vector.load %arg12[%c56_135, %c0_136] : memref<64x128xf32, #tpu.memory_space<vmem>>, vector<8x128xf32>
    tpu.vector_store %arg12[%c56_135, %c0_136], %142 {strides = array<i32>} : memref<64x128xf32, #tpu.memory_space<vmem>>, vector<8x128xf32>,
    %c0_137 = arith.constant 0 : index
    %c0_138 = arith.constant 0 : index
    %c0_139 = arith.constant 0 : index
    %144 = vector.load %arg10[%c0_137, %c0_138, %c0_139] : memref<2x8x128xf32, #tpu.memory_space<vmem>>, vector<1x8x128xf32>
    %145 = vector.shape_cast %144 : vector<1x8x128xf32> to vector<8x128xf32>
    %146 = vector.shape_cast %133 : vector<8x128xf32> to vector<1x8x128xf32>
    tpu.vector_store %arg10[%c0_137, %c0_138, %c0_139], %146 {strides = array<i32>} : memref<2x8x128xf32, #tpu.memory_space<vmem>>, vector<1x8x128xf32>,
    %c1_140 = arith.constant 1 : index
    %c0_141 = arith.constant 0 : index
    %c0_142 = arith.constant 0 : index
    %147 = vector.load %arg10[%c1_140, %c0_141, %c0_142] : memref<2x8x128xf32, #tpu.memory_space<vmem>>, vector<1x8x128xf32>
    %148 = vector.shape_cast %147 : vector<1x8x128xf32> to vector<8x128xf32>
    %149 = vector.shape_cast %142 : vector<8x128xf32> to vector<1x8x128xf32>
    tpu.vector_store %arg10[%c1_140, %c0_141, %c0_142], %149 {strides = array<i32>} : memref<2x8x128xf32, #tpu.memory_space<vmem>>, vector<1x8x128xf32>,
    %c0_143 = arith.constant 0 : index
    %c0_144 = arith.constant 0 : index
    %150 = vector.load %arg12[%c0_143, %c0_144] : memref<64x128xf32, #tpu.memory_space<vmem>>, vector<64x128xf32>
    %151 = math.tanh %150 : vector<64x128xf32>
    %c0_145 = arith.constant 0 : index
    %c0_146 = arith.constant 0 : index
    %152 = vector.load %arg7[%c0_145, %c0_146] : memref<128x128xf32, #tpu.memory_space<vmem>>, vector<128x128xf32>
    %cst_147 = arith.constant dense<0.000000e+00> : vector<64x128xf32>
    %153 = tpu.matmul %151, %152, %cst_147 {dimension_numbers = #tpu.dot_dimension_numbers<[1], [0], [0], [1], [0, 0, 1, 1], [], []>} : vector<64x128xf32>, vector<128x128xf32>, vector<64x128xf32> -> vector<64x128xf32>
    %c0_148 = arith.constant 0 : index
    %c0_149 = arith.constant 0 : index
    %154 = vector.load %arg8[%c0_148, %c0_149] : memref<1x128xf32, #tpu.memory_space<vmem>>, vector<1x128xf32>
    %155 = vector.broadcast %154 : vector<1x128xf32> to vector<64x128xf32>
    %156 = arith.addf %153, %155 : vector<64x128xf32>
    %c0_150 = arith.constant 0 : index
    %c0_151 = arith.constant 0 : index
    %157 = vector.load %arg9[%c0_150, %c0_151] : memref<64x128xf32, #tpu.memory_space<vmem>>, vector<64x128xf32>
    tpu.vector_store %arg9[%c0_150, %c0_151], %156 {strides = array<i32>} : memref<64x128xf32, #tpu.memory_space<vmem>>, vector<64x128xf32>,
    return
  }
  func.func @transform_0(%arg0: i32) -> (i32, i32) {
    %c0_i32 = arith.constant 0 : i32
    %c0_i32_0 = arith.constant 0 : i32
    %c0_i32_1 = arith.constant 0 : i32
    return %c0_i32, %c0_i32_0 : i32, i32
  }
  func.func @transform_1(%arg0: i32) -> (i32, i32, i32) {
    %c0_i32 = arith.constant 0 : i32
    %c0_i32_0 = arith.constant 0 : i32
    %c0_i32_1 = arith.constant 0 : i32
    %c0_i32_2 = arith.constant 0 : i32
    return %c0_i32, %c0_i32_0, %c0_i32_1 : i32, i32, i32
  }
  func.func @transform_2(%arg0: i32) -> (i32, i32) {
    %c0_i32 = arith.constant 0 : i32
    %c0_i32_0 = arith.constant 0 : i32
    %c0_i32_1 = arith.constant 0 : i32
    return %c0_i32, %c0_i32_0 : i32, i32
  }
  func.func @transform_3(%arg0: i32) -> (i32, i32, i32) {
    %c0_i32 = arith.constant 0 : i32
    %c0_i32_0 = arith.constant 0 : i32
    %c0_i32_1 = arith.constant 0 : i32
    %c0_i32_2 = arith.constant 0 : i32
    return %c0_i32, %c0_i32_0, %c0_i32_1 : i32, i32, i32
  }
  func.func @transform_4(%arg0: i32) -> (i32, i32, i32) {
    %c0_i32 = arith.constant 0 : i32
    %c0_i32_0 = arith.constant 0 : i32
    %c0_i32_1 = arith.constant 0 : i32
    %c0_i32_2 = arith.constant 0 : i32
    return %c0_i32, %c0_i32_0, %c0_i32_1 : i32, i32, i32
  }
  func.func @transform_5(%arg0: i32) -> (i32, i32, i32) {
    %c0_i32 = arith.constant 0 : i32
    %c0_i32_0 = arith.constant 0 : i32
    %c0_i32_1 = arith.constant 0 : i32
    %c0_i32_2 = arith.constant 0 : i32
    return %c0_i32, %c0_i32_0, %c0_i32_1 : i32, i32, i32
  }
  func.func @transform_6(%arg0: i32) -> (i32, i32) {
    %c0_i32 = arith.constant 0 : i32
    %c0_i32_0 = arith.constant 0 : i32
    %c0_i32_1 = arith.constant 0 : i32
    return %c0_i32, %c0_i32_0 : i32, i32
  }
  func.func @transform_7(%arg0: i32) -> (i32, i32) {
    %c0_i32 = arith.constant 0 : i32
    %c0_i32_0 = arith.constant 0 : i32
    %c0_i32_1 = arith.constant 0 : i32
    return %c0_i32, %c0_i32_0 : i32, i32
  }
  func.func @transform_8(%arg0: i32) -> (i32, i32) {
    %c0_i32 = arith.constant 0 : i32
    %c0_i32_0 = arith.constant 0 : i32
    %c0_i32_1 = arith.constant 0 : i32
    return %c0_i32, %c0_i32_0 : i32, i32
  }
  func.func @transform_9(%arg0: i32) -> (i32, i32, i32) {
    %c0_i32 = arith.constant 0 : i32
    %c0_i32_0 = arith.constant 0 : i32
    %c0_i32_1 = arith.constant 0 : i32
    %c0_i32_2 = arith.constant 0 : i32
    return %c0_i32, %c0_i32_0, %c0_i32_1 : i32, i32, i32
  }
}

</mosaic_0001>

<bundles_post_ra>
// kernel: complete_rnn_forward.1
= control target key start
LH: loop header
LB: loop body
LE: loop exit
PB: predicated region body
PF: predicated region fallthrough
CT: control target
= control target key end

     0   :  { %v4696_v3 = vmov 0.0|0.0   ;;  %vm4697_vm0 = vmmov 0   ;;  %v4698_v8 = vmov 0.0   ;;  %vm55_vm1 = vcmask 523264   ;;  %s5777_s0 = inlined_call_operand.vmem [shape: f32[64,64], index: 0, kind: input, shape index: {}]   ;;  %s5778_s1 = inlined_call_operand.vmem [shape: f32[2,8,128], index: 1, kind: input, shape index: {}]   ;;  %s5779_s2 = inlined_call_operand.vmem [shape: f32[64,128], index: 2, kind: input, shape index: {}]   ;;  %s5780_s3 = inlined_call_operand.vmem [shape: f32[2,128,128], index: 3, kind: input, shape index: {}]   ;;  %s5781_s4 = inlined_call_operand.vmem [shape: f32[1,128,128], index: 4, kind: input, shape index: {}]   ;;  %s5782_s5 = inlined_call_operand.vmem [shape: f32[2,1,128], index: 5, kind: input, shape index: {}]   ;;  %s5783_s6 = inlined_call_operand.vmem [shape: f32[128,128], index: 6, kind: input, shape index: {}]   ;;  %s5784_s7 = inlined_call_operand.vmem [shape: f32[1,128], index: 7, kind: input, shape index: {}]   ;;  %s5785_s8 = inlined_call_operand.vmem [shape: f32[64,128], index: 8, kind: output, shape index: {0}]   ;;  %s5786_s9 = inlined_call_operand.hbm [shape: f32[2,8,128], index: 9, kind: output, shape index: {1}]  }
   0x1   :  { %v205_v0 = vld [vmem:[%s5780_s3] sm:$0xff]  ;;  %v206_v1 = vld [vmem:[%s5780_s3 + $0x8] sm:$0xff]  ;;  %v207_v2 = vld [vmem:[%s5780_s3 + $0x10] sm:$0xff]  ;;  %4009 = vmatprep.subr.bf16.mxu1 %v4696_v3  ;;  %3141 = vmatprep.mubr.msk.f32.mxu1 %vm4697_vm0, %v4698_v8 }
   0x2   :  { %v4762_v4 = vpack.c.bf16 %v206_v1, %v205_v0  ;;  %v208_v5 = vld [vmem:[%s5780_s3 + $0x18] sm:$0xff]  ;;  %v40_v6 = vld [vmem:[%s5779_s2] sm:$0xff]  ;;  %v41_v7 = vld [vmem:[%s5779_s2 + $0x8] sm:$0xff] }
   0x3   :  { %v4776_v9 = vpack.c.bf16 %v208_v5, %v207_v2  ;;  %v3993_v10 = vpack.c.bf16 %v41_v7, %v40_v6  ;;  %v42_v11 = vld [vmem:[%s5779_s2 + $0x10] sm:$0xff]  ;;  %v43_v12 = vld [vmem:[%s5779_s2 + $0x18] sm:$0xff]  ;;  %v209_v13 = vld [vmem:[%s5780_s3 + $0x20] sm:$0xff] }
   0x4   :  { %4011 = vmatpush3.bf16.msra.mxu1 %v4762_v4  ;;  %v210_v14 = vld [vmem:[%s5780_s3 + $0x28] sm:$0xff]  ;;  %v3997_v15 = vpack.c.bf16 %v43_v12, %v42_v11  ;;  %v44_v16 = vld [vmem:[%s5779_s2 + $0x20] sm:$0xff]  ;;  %v211_v19 = vld [vmem:[%s5780_s3 + $0x30] sm:$0xff] }
   0x5   :  { %4012 = vmatprep.subr.bf16.mxu1 %v4696_v3  ;;  %3994 = vmatprep.subr.bf16.mxu0 %v3993_v10  ;;  %v45_v17 = vld [vmem:[%s5779_s2 + $0x28] sm:$0xff]  ;;  %v4798_v18 = vpack.c.bf16 %v210_v14, %v209_v13  ;;  %v32_v21 = vld [vmem:[%s5777_s0] sm:$0xff]  ;;  %v212_v22 = vld [vmem:[%s5780_s3 + $0x38] sm:$0xff] }
   0x6   :  { %3996 = vmatpush3.bf16.msra.mxu0 %v3993_v10  ;;  %v4001_v20 = vpack.c.bf16 %v45_v17, %v44_v16  ;;  %v46_v23 = vld [vmem:[%s5779_s2 + $0x30] sm:$0xff]  ;;  %v47_v24 = vld [vmem:[%s5779_s2 + $0x38] sm:$0xff]  ;;  %3097 = vmatprep.mubr.msk.f32.mxu0 %vm55_vm1, %v32_v21  ;;  %v4818_v25 = vpack.c.bf16 %v212_v22, %v211_v19  ;;  %v213_v27 = vld [vmem:[%s5780_s3 + $0x40] sm:$0xff] }
   0x7   :  { %3998 = vmatprep.subr.bf16.mxu0 %v3997_v15  ;;  %v4005_v26 = vpack.c.bf16 %v47_v24, %v46_v23  ;;  %v214_v28 = vld [vmem:[%s5780_s3 + $0x48] sm:$0xff]  ;;  %v2504_v30 = vld [vmem:[%s5780_s3 + $0x80] sm:$0xff]  ;;  %v215_v32 = vld [vmem:[%s5780_s3 + $0x50] sm:$0xff] }
   0x8   :  { %4014 = vmatpush3.bf16.msra.mxu1 %v4776_v9  ;;  %v4828_v29 = vpack.c.bf16 %v214_v28, %v213_v27  ;;  %v2505_v31 = vld [vmem:[%s5780_s3 + $0x88] sm:$0xff]  ;;  %v216_v33 = vld [vmem:[%s5780_s3 + $0x58] sm:$0xff]  ;;  %v2506_v36 = vld [vmem:[%s5780_s3 + $0x90] sm:$0xff] }
   0x9   :  { %4015 = vmatprep.subr.bf16.mxu1 %v4696_v3  ;;  %v33_v34 = vld [vmem:[%s5777_s0 + $0x8] sm:$0xff]  ;;  %v4846_v35 = vpack.c.bf16 %v2505_v31, %v2504_v30  ;;  %v4852_v37 = vpack.c.bf16 %v216_v33, %v215_v32  ;;  %v2507_v38 = vld [vmem:[%s5780_s3 + $0x98] sm:$0xff]  ;;  %v34_v39 = vld [vmem:[%s5777_s0 + $0x10] sm:$0xff] }
   0xa   :  { %4000 = vmatpush3.bf16.msra.mxu0 %v3997_v15 }
   0xb   :  { %4002 = vmatprep.subr.bf16.mxu0 %v4001_v20 }
   0xc   :  { %4017 = vmatpush3.bf16.msra.mxu1 %v4798_v18 }
   0xd   :  { %4018 = vmatprep.subr.bf16.mxu1 %v4696_v3 }
   0xe   :  { %4004 = vmatpush3.bf16.msra.mxu0 %v4001_v20 }
   0xf   :  { %4006 = vmatprep.subr.bf16.mxu0 %v4005_v26 }
  0x10   :  { %4020 = vmatpush3.bf16.msra.mxu1 %v4818_v25 }
  0x11   :  { %4021 = vmatprep.subr.bf16.mxu1 %v4696_v3 }
  0x12   :  { %4008 = vmatpush3.bf16.msra.mxu0 %v4005_v26 }
  0x13   :  { %4033 = vmatprep.subr.bf16.mxu0 %v4696_v3 }
  0x14   :  { %4023 = vmatpush3.bf16.msra.mxu1 %v4828_v29 }
  0x15   :  { %15 = vsyncpa [#allocation5], 0  ;;  %4024 = vmatprep.subr.bf16.mxu1 %v4696_v3  ;;  %v217_v40 = vld [vmem:[%s5780_s3 + $0x60] sm:$0xff]  ;;  %v218_v41 = vld [vmem:[%s5780_s3 + $0x68] sm:$0xff]  ;;  %3098 = vmatmul.mubr.msk.f32.vlgmr.msra.gmra.mrb[0].mxu0 %vm55_vm1, %v33_v34  ;;  %v4870_v42 = vpack.c.bf16 %v2507_v38, %v2506_v36  ;;  %s4699_s25 = smov [#allocation4]  }
  0x16   :  { %4035 = vmatpush3.bf16.msra.mxu0 %v4846_v35  ;;  %3100 = vmatprep.mubr.msk.f32.mxu0 %vm55_vm1, %v34_v39  ;;  %v35_v43 = vld [vmem:[%s5777_s0 + $0x18] sm:$0xff]  ;;  %v4877_v44 = vpack.c.bf16 %v218_v41, %v217_v40  ;;  %v2508_v45 = vld [vmem:[%s5780_s3 + $0xa0] sm:$0xff]  ;;  %v2509_v46 = vld [vmem:[%s5780_s3 + $0xa8] sm:$0xff]  ;;  %s2479_s2 = sshll.u32 %s4699_s25, 4  ;;  %s2480_s2 = int_to_ptr.vmem [resolvable:$true] %s2479_s2 }
  0x17   :  { %4036 = vmatprep.subr.bf16.mxu0 %v4696_v3  ;;  %v36_v47 = vld [vmem:[%s5777_s0 + $0x20] sm:$0xff]  ;;  %v219_v48 = vld [vmem:[%s5780_s3 + $0x70] sm:$0xff]  ;;  %v220_v49 = vld [vmem:[%s5780_s3 + $0x78] sm:$0xff]  ;;  %v4898_v50 = vpack.c.bf16 %v2509_v46, %v2508_v45  ;;  %s4672_s26 = scalar_lea.vmem %s2480_s2, 256  ;;  %p4677_p1 = scmp.lt.s32.totalorder %s2480_s2, %s2480_s2 }
  0x18   :  { %4026 = vmatpush3.bf16.msra.mxu1 %v4852_v37  ;;  %v37_v51 = vld [vmem:[%s5777_s0 + $0x28] sm:$0xff]  ;;  %v4905_v52 = vpack.c.bf16 %v220_v49, %v219_v48  ;;  %v2510_v53 = vld [vmem:[%s5780_s3 + $0xb0] sm:$0xff]  ;;  %v2511_v54 = vld [vmem:[%s5780_s3 + $0xb8] sm:$0xff]  ;;  %p4673_p0 = scmp.ne.s32.totalorder %s2480_s2, %s4672_s26  ;;  %p4678_p2 = scmp.lt.s32.totalorder %s4672_s26, %s4672_s26 }
  0x19   :  { %4027 = vmatprep.subr.bf16.mxu1 %v4696_v3  ;;  %3101 = vmatmul.mubr.msk.f32.gmra.mrb[2].mxu0 %vm55_vm1, %v35_v43  ;;  %v38_v55 = vld [vmem:[%s5777_s0 + $0x30] sm:$0xff]  ;;  %v293_v56 = vld [vmem:[%s5781_s4] sm:$0xff]  ;;  %v294_v57 = vld [vmem:[%s5781_s4 + $0x8] sm:$0xff]  ;;  %v4926_v58 = vpack.c.bf16 %v2511_v54, %v2510_v53 }
  0x1a   :  { %4038 = vmatpush3.bf16.msra.mxu0 %v4870_v42  ;;  %3103 = vmatprep.mubr.msk.f32.mxu0 %vm55_vm1, %v36_v47  ;;  %v39_v59 = vld [vmem:[%s5777_s0 + $0x38] sm:$0xff]  ;;  %v201_v60 = vld [vmem:[%s5778_s1] sm:$0xff]  ;;  %v2513_v62 = vld [vmem:[%s5780_s3 + $0xc8] sm:$0xff]  ;;  %v4944_v63 = vpack.c.bf16 %v294_v57, %v293_v56  ;;  %p4679_p3 = por %p4678_p2, %p4677_p1 }
  0x1b   :  { %4039 = vmatprep.subr.bf16.mxu0 %v4696_v3  ;;  %v2512_v61 = vld [vmem:[%s5780_s3 + $0xc0] sm:$0xff]  ;;  %v295_v0 = vld [vmem:[%s5781_s4 + $0x10] sm:$0xff]  ;;  %v296_v1 = vld [vmem:[%s5781_s4 + $0x18] sm:$0xff] }
  0x1c   :  { %4029 = vmatpush3.bf16.msra.mxu1 %v4877_v44  ;;  %v4954_v2 = vpack.c.bf16 %v2513_v62, %v2512_v61  ;;  %v2514_v5 = vld [vmem:[%s5780_s3 + $0xd0] sm:$0xff]  ;;  %v2515_v6 = vld [vmem:[%s5780_s3 + $0xd8] sm:$0xff]  ;;  %v4966_v7 = vpack.c.bf16 %v296_v1, %v295_v0  ;;  %v297_v10 = vld [vmem:[%s5781_s4 + $0x20] sm:$0xff]  ;;  %p4680_p4 = pnand %p4679_p3, %p4673_p0 }
  0x1d   :  { %4030 = vmatprep.subr.bf16.mxu1 %v4696_v3  ;;  %3104 = vmatmul.mubr.msk.f32.gmra.mrb[4].mxu0 %vm55_vm1, %v37_v51  ;;  %v298_v11 = vld [vmem:[%s5781_s4 + $0x28] sm:$0xff]  ;;  %v4978_v12 = vpack.c.bf16 %v2515_v6, %v2514_v5  ;;  %v2516_v13 = vld [vmem:[%s5780_s3 + $0xe0] sm:$0xff]  ;;  %v299_v16 = vld [vmem:[%s5781_s4 + $0x30] sm:$0xff] }
  0x1e   :  { %4041 = vmatpush3.bf16.msra.mxu0 %v4898_v50  ;;  %3106 = vmatprep.mubr.msk.f32.mxu0 %vm55_vm1, %v38_v55  ;;  %v2517_v14 = vld [vmem:[%s5780_s3 + $0xe8] sm:$0xff]  ;;  %v4988_v15 = vpack.c.bf16 %v298_v11, %v297_v10  ;;  %v300_v17 = vld [vmem:[%s5781_s4 + $0x38] sm:$0xff]  ;;  %v2518_v20 = vld [vmem:[%s5780_s3 + $0xf0] sm:$0xff] }
  0x1f   :  { %4042 = vmatprep.subr.bf16.mxu0 %v4696_v3  ;;  %v4998_v19 = vpack.c.bf16 %v2517_v14, %v2516_v13  ;;  %v2519_v21 = vld [vmem:[%s5780_s3 + $0xf8] sm:$0xff]  ;;  %v5008_v22 = vpack.c.bf16 %v300_v17, %v299_v16  ;;  %v2503_v24 = vld [vmem:[%s5778_s1 + $0x8] sm:$0xff]  ;;  %v301_v26 = vld [vmem:[%s5781_s4 + $0x40] sm:$0xff] }
  0x20   :  { %4032 = vmatpush3.bf16.msra.mxu1 %v4905_v52  ;;  %v5012_v23 = vpack.c.bf16 %v2519_v21, %v2518_v20  ;;  %v302_v27 = vld [vmem:[%s5781_s4 + $0x48] sm:$0xff]  ;;  %v303_v30 = vld [vmem:[%s5781_s4 + $0x50] sm:$0xff]  ;;  %v304_v31 = vld [vmem:[%s5781_s4 + $0x58] sm:$0xff] }
  0x21   :  { %4057 = vmatprep.subr.bf16.mxu1 %v4696_v3  ;;  %3107 = vmatmul.mubr.msk.f32.gmra.mrb[6].mxu0 %vm55_vm1, %v39_v59  ;;  %v5046_v28 = vpack.c.bf16 %v302_v27, %v301_v26  ;;  %v5056_v32 = vpack.c.bf16 %v304_v31, %v303_v30  ;;  %v305_v33 = vld [vmem:[%s5781_s4 + $0x60] sm:$0xff]  ;;  %v306_v34 = vld [vmem:[%s5781_s4 + $0x68] sm:$0xff]  ;;  %v307_v38 = vld [vmem:[%s5781_s4 + $0x70] sm:$0xff] }
  0x22   :  { %4044 = vmatpush3.bf16.msra.mxu0 %v4926_v58  ;;  %3176 = vmatprep.mubr.msk.f32.mxu0 %vm4697_vm0, %v4698_v8  ;;  %v5066_v36 = vpack.c.bf16 %v306_v34, %v305_v33  ;;  %v308_v39 = vld [vmem:[%s5781_s4 + $0x78] sm:$0xff]  ;;  %v2492_v41 = vld [vmem:[%s5782_s5] ss:$0 sm:$0xff]  ;;  %v5134_v13 = vld [vmem:[%s5782_s5 + $0x1] ss:$0 sm:$0xff] }
  0x23   :  { %3142 = vmatmul.mubr.f32.vlgmr.msra.gmra.mrb[0].mxu1 %v201_v60  ;;  %4045 = vmatprep.subr.bf16.mxu0 %v4696_v3  ;;  %v5075_v40 = vpack.c.bf16 %v308_v39, %v307_v38 }
  0x24   :  { %4059 = vmatpush3.bf16.msra.mxu1 %v4944_v63  ;;  %3211 = vmatprep.mubr.msk.f32.mxu1 %vm4697_vm0, %v4698_v8 }
  0x25   :  { %4060 = vmatprep.subr.bf16.mxu1 %v4696_v3 }
  0x26   :  { %4047 = vmatpush3.bf16.msra.mxu0 %v4954_v2 }
  0x27   :  { %4048 = vmatprep.subr.bf16.mxu0 %v4696_v3 }
  0x28   :  { %4062 = vmatpush3.bf16.msra.mxu1 %v4966_v7 }
  0x29   :  { %4063 = vmatprep.subr.bf16.mxu1 %v4696_v3 }
  0x2a   :  { %4050 = vmatpush3.bf16.msra.mxu0 %v4978_v12 }
  0x2b   :  { %4051 = vmatprep.subr.bf16.mxu0 %v4696_v3 }
  0x2c   :  { %4065 = vmatpush3.bf16.msra.mxu1 %v4988_v15 }
  0x2d   :  { %4066 = vmatprep.subr.bf16.mxu1 %v4696_v3 }
  0x2e   :  { %4053 = vmatpush3.bf16.msra.mxu0 %v4998_v19 }
  0x2f   :  { %4054 = vmatprep.subr.bf16.mxu0 %v4696_v3 }
  0x30   :  { %4068 = vmatpush3.bf16.msra.mxu1 %v5008_v22 }
  0x31   :  { %4069 = vmatprep.subr.bf16.mxu1 %v4696_v3 }
  0x32   :  { %4056 = vmatpush3.bf16.msra.mxu0 %v5012_v23 }
  0x33   :  { %4081 = vmatprep.subr.bf16.mxu0 %v4696_v3 }
  0x34   :  { %4071 = vmatpush3.bf16.msra.mxu1 %v5046_v28 }
  0x35   :  { %3177 = vmatmul.mubr.f32.vlgmr.msra.gmra.mrb[8].mxu0 %v2503_v24  ;;  %4072 = vmatprep.subr.bf16.mxu1 %v4696_v3 }
  0x36   :  { %4083 = vmatpush3.bf16.msra.mxu0 %v4762_v4  ;;  %3246 = vmatprep.mubr.msk.f32.mxu0 %vm4697_vm0, %v4698_v8 }
  0x37   :  { %4084 = vmatprep.subr.bf16.mxu0 %v4696_v3 }
  0x38   :  { %4074 = vmatpush3.bf16.msra.mxu1 %v5056_v32 }
  0x39   :  { %4075 = vmatprep.subr.bf16.mxu1 %v4696_v3 }
  0x3a   :  { %4086 = vmatpush3.bf16.msra.mxu0 %v4776_v9 }
  0x3b   :  { %4087 = vmatprep.subr.bf16.mxu0 %v4696_v3 }
  0x3c   :  { %4077 = vmatpush3.bf16.msra.mxu1 %v5066_v36 }
  0x3d   :  { %4078 = vmatprep.subr.bf16.mxu1 %v4696_v3 }
  0x3e   :  { %4089 = vmatpush3.bf16.msra.mxu0 %v4798_v18 }
  0x3f   :  { %4090 = vmatprep.subr.bf16.mxu0 %v4696_v3 }
  0x40   :  { %4080 = vmatpush3.bf16.msra.mxu1 %v5075_v40 }
  0x41   :  { %4105 = vmatprep.subr.bf16.mxu1 %v4696_v3 }
  0x42   :  { %4092 = vmatpush3.bf16.msra.mxu0 %v4818_v25 }
  0x43   :  { %4093 = vmatprep.subr.bf16.mxu0 %v4696_v3 }
  0x46   :  { %4095 = vmatpush3.bf16.msra.mxu0 %v4828_v29 }
  0x47   :  { %4096 = vmatprep.subr.bf16.mxu0 %v4696_v3 }
  0x4a   :  { %4098 = vmatpush3.bf16.msra.mxu0 %v4852_v37 }
  0x4b   :  { %4099 = vmatprep.subr.bf16.mxu0 %v4696_v3 }
  0x4e   :  { %4101 = vmatpush3.bf16.msra.mxu0 %v4877_v44 }
  0x4f   :  { %4102 = vmatprep.subr.bf16.mxu0 %v4696_v3 }
  0x52   :  { %4104 = vmatpush3.bf16.msra.mxu0 %v4905_v52 }
  0x53   :  { %4129 = vmatprep.subr.bf16.mxu0 %v4696_v3 }
  0xe8   :  { %v3099_v43 = vpop.f32.mrb[0].mxu0 }
  0xe9   :  { %v152_v45 = vadd.f32 %v3099_v43, %v2492_v41  ;;  %v146_v46 = vpop.f32.mrb[1].mxu0 }
  0xea   :  { %v147_v56 = vadd.f32 %v2492_v41, %v146_v46 }
  0xec   :  { %v3102_v47 = vpop.f32.mrb[2].mxu0 }
  0xed   :  { %v5083_v48 = vadd.f32 %v3102_v47, %v2492_v41  ;;  %v156_v49 = vpop.f32.mrb[3].mxu0  ;;  %v1266_v47 = vld [vmem:[%s5780_s3 + $0x20] sm:$0xff] }
  0xee   :  { %v5085_v51 = vadd.f32 %v2492_v41, %v156_v49 }
  0xf0   :  { %v3105_v53 = vpop.f32.mrb[4].mxu0 }
  0xf1   :  { %v5087_v54 = vadd.f32 %v3105_v53, %v2492_v41  ;;  %v166_v55 = vpop.f32.mrb[5].mxu0  ;;  %v2573_v53 = vld [vmem:[%s5780_s3 + $0xa8] sm:$0xff] }
  0xf2   :  { %v5089_v57 = vadd.f32 %v2492_v41, %v166_v55 }
  0xf4   :  { %v3108_v59 = vpop.f32.mrb[6].mxu0 }
  0xf5   :  { %v5091_v61 = vadd.f32 %v3108_v59, %v2492_v41  ;;  %v176_v62 = vpop.f32.mrb[7].mxu0  ;;  %v1269_v59 = vld [vmem:[%s5780_s3 + $0x38] sm:$0xff] }
  0xf6   :  { %v287_v60 = vpop.f32.mrb[0].mxu1  ;;  %v5093_v5 = vadd.f32 %v2492_v41, %v176_v62  ;;  %v2574_v62 = vld [vmem:[%s5780_s3 + $0xb0] sm:$0xff] }
  0xf7   :  { %v291_v0 = vadd.f32 %v287_v60, %v147_v56  ;;  %v3143_v1 = vpop.f32.mrb[1].mxu1  ;;  %v1268_v56 = vld [vmem:[%s5780_s3 + $0x30] sm:$0xff] }
  0xf8   :  { %v5331_v1 = vpack.c.bf16 %v1269_v59, %v1268_v56  ;;  %v1362_v56 = vld [vmem:[%s5781_s4 + $0x60] sm:$0xff]  ;;  %v1363_v59 = vld [vmem:[%s5781_s4 + $0x68] sm:$0xff] }
  0xf9   :  { %4623 = vtanh.f32 %v291_v0  ;;  %v2575_v0 = vld [vmem:[%s5780_s3 + $0xb8] sm:$0xff] }
 0x103   :  { %v4624_v6 = vpop.eup %4623 }
 0x104   :  { %3212 = vmatmul.mubr.f32.vlgmr.msra.gmra.mrb[2].mxu1 %v4624_v6  ;;  %3247 = vmatmul.mubr.f32.vlgmr.msra.gmra.mrb[10].mxu0 %v4624_v6  ;;  %v1270_v6 = vld [vmem:[%s5780_s3 + $0x40] sm:$0xff] }
 0x105   :  { %4131 = vmatpush3.bf16.msra.mxu0 %v4944_v63  ;;  %4107 = vmatpush3.bf16.msra.mxu1 %v4846_v35 }
 0x106   :  { %4132 = vmatprep.subr.bf16.mxu0 %v4696_v3  ;;  %4108 = vmatprep.subr.bf16.mxu1 %v4696_v3 }
 0x107   :  { %3316 = vmatprep.mubr.msk.f32.mxu0 %vm4697_vm0, %v4698_v8  ;;  %3281 = vmatprep.mubr.msk.f32.mxu1 %vm4697_vm0, %v4698_v8 }
 0x108   :  { %v392_v10 = vpop.f32.mrb[8].mxu0 }
 0x109   :  { %4134 = vmatpush3.bf16.msra.mxu0 %v4966_v7  ;;  %4110 = vmatpush3.bf16.msra.mxu1 %v4870_v42  ;;  %v3178_v11 = vpop.f32.mrb[9].mxu0 }
 0x10a   :  { %4135 = vmatprep.subr.bf16.mxu0 %v4696_v3  ;;  %4111 = vmatprep.subr.bf16.mxu1 %v4696_v3  ;;  %v5341_v11 = vpack.c.bf16 %v2575_v0, %v2574_v62  ;;  %v5490_v62 = vpack.c.bf16 %v1363_v59, %v1362_v56  ;;  %v1364_v0 = vld [vmem:[%s5781_s4 + $0x70] sm:$0xff] }
 0x10d   :  { %4137 = vmatpush3.bf16.msra.mxu0 %v4988_v15  ;;  %4113 = vmatpush3.bf16.msra.mxu1 %v4898_v50 }
 0x10e   :  { %4138 = vmatprep.subr.bf16.mxu0 %v4696_v3  ;;  %4114 = vmatprep.subr.bf16.mxu1 %v4696_v3 }
 0x111   :  { %4140 = vmatpush3.bf16.msra.mxu0 %v5008_v22  ;;  %4116 = vmatpush3.bf16.msra.mxu1 %v4926_v58 }
 0x112   :  { %4141 = vmatprep.subr.bf16.mxu0 %v4696_v3  ;;  %4117 = vmatprep.subr.bf16.mxu1 %v4696_v3 }
 0x115   :  { %4143 = vmatpush3.bf16.msra.mxu0 %v5046_v28  ;;  %4119 = vmatpush3.bf16.msra.mxu1 %v4954_v2 }
 0x116   :  { %4144 = vmatprep.subr.bf16.mxu0 %v4696_v3  ;;  %4120 = vmatprep.subr.bf16.mxu1 %v4696_v3 }
 0x119   :  { %4146 = vmatpush3.bf16.msra.mxu0 %v5056_v32  ;;  %4122 = vmatpush3.bf16.msra.mxu1 %v4978_v12 }
 0x11a   :  { %4147 = vmatprep.subr.bf16.mxu0 %v4696_v3  ;;  %4123 = vmatprep.subr.bf16.mxu1 %v4696_v3 }
 0x11d   :  { %4149 = vmatpush3.bf16.msra.mxu0 %v5066_v36  ;;  %4125 = vmatpush3.bf16.msra.mxu1 %v4998_v19 }
 0x11e   :  { %4150 = vmatprep.subr.bf16.mxu0 %v4696_v3  ;;  %4126 = vmatprep.subr.bf16.mxu1 %v4696_v3 }
 0x121   :  { %4152 = vmatpush3.bf16.msra.mxu0 %v5075_v40  ;;  %4128 = vmatpush3.bf16.msra.mxu1 %v5012_v23 }
 0x122   :  { %4153 = vmatprep.subr.bf16.mxu1 %v4696_v3  ;;  %4177 = vmatprep.subr.bf16.mxu0 %v4696_v3 }
 0x1d7   :  { %v462_v14 = vpop.f32.mrb[2].mxu1  ;;  %v552_v16 = vpop.f32.mrb[10].mxu0 }
 0x1d8   :  { %v463_v17 = vadd.f32 %v462_v14, %v392_v10  ;;  %v556_v20 = vadd.f32 %v552_v16, %v152_v45  ;;  %v3213_v21 = vpop.f32.mrb[3].mxu1  ;;  %v3248_v24 = vpop.f32.mrb[11].mxu0  ;;  %v1271_v10 = vld [vmem:[%s5780_s3 + $0x48] sm:$0xff]  ;;  %v1272_v16 = vld [vmem:[%s5780_s3 + $0x50] sm:$0xff] }
 0x1d9   :  { %v5345_v14 = vpack.c.bf16 %v1271_v10, %v1270_v6  ;;  %v1274_v21 = vld [vmem:[%s5780_s3 + $0x60] sm:$0xff]  ;;  %v1275_v24 = vld [vmem:[%s5780_s3 + $0x68] sm:$0xff]  ;;  %v1365_v6 = vld [vmem:[%s5781_s4 + $0x78] sm:$0xff] }
 0x1da   :  { %v466_v26 = vadd.f32 %v5134_v13, %v463_v17  ;;  %4625 = vtanh.f32 %v556_v20  ;;  %v1273_v17 = vld [vmem:[%s5780_s3 + $0x58] sm:$0xff]  ;;  %v5500_v10 = vpack.c.bf16 %v1365_v6, %v1364_v0  ;;  %v2346_v6 = vld [vmem:[%s5783_s6 + $0x50] sm:$0xff] }
 0x1db   :  { %v5357_v20 = vpack.c.bf16 %v1273_v17, %v1272_v16 }
 0x1dc   :  { %4627 = vtanh.f32 %v466_v26  ;;  %v5367_v26 = vpack.c.bf16 %v1275_v24, %v1274_v21 }
 0x1e4   :  { %v4626_v27 = vpop.eup %4625 }
 0x1e5   :  { %3317 = vmatmul.mubr.f32.vlgmr.msra.gmra.mrb[12].mxu0 %v4626_v27 }
 0x1e6   :  { %v5137_v30 = vpop.eup %4627  ;;  %4179 = vmatpush3.bf16.msra.mxu0 %v4846_v35  ;;  %3386 = vmatprep.mubr.msk.f32.mxu0 %vm4697_vm0, %v4698_v8 }
 0x1e7   :  { %3282 = vmatmul.mubr.f32.vlgmr.msra.gmra.mrb[4].mxu1 %v5137_v30  ;;  %4180 = vmatprep.subr.bf16.mxu0 %v4696_v3 }
 0x1e8   :  { %4155 = vmatpush3.bf16.msra.mxu1 %v4762_v4  ;;  %3351 = vmatprep.mubr.msk.f32.mxu1 %vm4697_vm0, %v4698_v8 }
 0x1e9   :  { %4156 = vmatprep.subr.bf16.mxu1 %v4696_v3 }
 0x1ea   :  { %4182 = vmatpush3.bf16.msra.mxu0 %v4870_v42 }
 0x1eb   :  { %4183 = vmatprep.subr.bf16.mxu0 %v4696_v3 }
 0x1ec   :  { %4158 = vmatpush3.bf16.msra.mxu1 %v4776_v9 }
 0x1ed   :  { %4159 = vmatprep.subr.bf16.mxu1 %v4696_v3 }
 0x1ee   :  { %4185 = vmatpush3.bf16.msra.mxu0 %v4898_v50 }
 0x1ef   :  { %4186 = vmatprep.subr.bf16.mxu0 %v4696_v3 }
 0x1f0   :  { %4161 = vmatpush3.bf16.msra.mxu1 %v4798_v18 }
 0x1f1   :  { %4162 = vmatprep.subr.bf16.mxu1 %v4696_v3 }
 0x1f2   :  { %4188 = vmatpush3.bf16.msra.mxu0 %v4926_v58 }
 0x1f3   :  { %4189 = vmatprep.subr.bf16.mxu0 %v4696_v3 }
 0x1f4   :  { %4164 = vmatpush3.bf16.msra.mxu1 %v4818_v25 }
 0x1f5   :  { %4165 = vmatprep.subr.bf16.mxu1 %v4696_v3 }
 0x1f6   :  { %4191 = vmatpush3.bf16.msra.mxu0 %v4954_v2 }
 0x1f7   :  { %4192 = vmatprep.subr.bf16.mxu0 %v4696_v3 }
 0x1f8   :  { %4167 = vmatpush3.bf16.msra.mxu1 %v4828_v29 }
 0x1f9   :  { %4168 = vmatprep.subr.bf16.mxu1 %v4696_v3 }
 0x1fa   :  { %4194 = vmatpush3.bf16.msra.mxu0 %v4978_v12 }
 0x1fb   :  { %4195 = vmatprep.subr.bf16.mxu0 %v4696_v3 }
 0x1fc   :  { %4170 = vmatpush3.bf16.msra.mxu1 %v4852_v37 }
 0x1fd   :  { %4171 = vmatprep.subr.bf16.mxu1 %v4696_v3 }
 0x1fe   :  { %4197 = vmatpush3.bf16.msra.mxu0 %v4998_v19 }
 0x1ff   :  { %4198 = vmatprep.subr.bf16.mxu0 %v4696_v3 }
 0x200   :  { %4173 = vmatpush3.bf16.msra.mxu1 %v4877_v44 }
 0x201   :  { %4174 = vmatprep.subr.bf16.mxu1 %v4696_v3 }
 0x202   :  { %4200 = vmatpush3.bf16.msra.mxu0 %v5012_v23 }
 0x203   :  { %4225 = vmatprep.subr.bf16.mxu0 %v4696_v3 }
 0x204   :  { %4176 = vmatpush3.bf16.msra.mxu1 %v4905_v52 }
 0x205   :  { %4201 = vmatprep.subr.bf16.mxu1 %v4696_v3 }
 0x207   :  { %3352 = vmatmul.mubr.f32.vlgmr.msra.gmra.mrb[6].mxu1 %v4626_v27  ;;  %v1276_v27 = vld [vmem:[%s5780_s3 + $0x70] sm:$0xff] }
 0x208   :  { %4203 = vmatpush3.bf16.msra.mxu1 %v4944_v63  ;;  %3421 = vmatprep.mubr.msk.f32.mxu1 %vm4697_vm0, %v4698_v8 }
 0x209   :  { %4204 = vmatprep.subr.bf16.mxu1 %v4696_v3 }
 0x20c   :  { %4206 = vmatpush3.bf16.msra.mxu1 %v4966_v7 }
 0x20d   :  { %4207 = vmatprep.subr.bf16.mxu1 %v4696_v3 }
 0x210   :  { %4209 = vmatpush3.bf16.msra.mxu1 %v4988_v15 }
 0x211   :  { %4210 = vmatprep.subr.bf16.mxu1 %v4696_v3 }
 0x214   :  { %4212 = vmatpush3.bf16.msra.mxu1 %v5008_v22 }
 0x215   :  { %4213 = vmatprep.subr.bf16.mxu1 %v4696_v3 }
 0x218   :  { %4215 = vmatpush3.bf16.msra.mxu1 %v5046_v28 }
 0x219   :  { %4216 = vmatprep.subr.bf16.mxu1 %v4696_v3 }
 0x21c   :  { %4218 = vmatpush3.bf16.msra.mxu1 %v5056_v32 }
 0x21d   :  { %4219 = vmatprep.subr.bf16.mxu1 %v4696_v3 }
 0x220   :  { %4221 = vmatpush3.bf16.msra.mxu1 %v5066_v36 }
 0x221   :  { %4222 = vmatprep.subr.bf16.mxu1 %v4696_v3 }
 0x224   :  { %4224 = vmatpush3.bf16.msra.mxu1 %v5075_v40 }
 0x225   :  { %4249 = vmatprep.subr.bf16.mxu1 %v4696_v3 }
 0x2b8   :  { %v726_v31 = vpop.f32.mrb[12].mxu0 }
 0x2b9   :  { %v3318_v33 = vpop.f32.mrb[13].mxu0 }
 0x2ba   :  { %v656_v34 = vpop.f32.mrb[4].mxu1 }
 0x2bb   :  { %v727_v38 = vadd.f32 %v726_v31, %v656_v34  ;;  %v3283_v39 = vpop.f32.mrb[5].mxu1  ;;  %v1277_v31 = vld [vmem:[%s5780_s3 + $0x78] sm:$0xff]  ;;  %v2576_v34 = vld [vmem:[%s5780_s3 + $0xc0] sm:$0xff] }
 0x2bc   :  { %v5377_v33 = vpack.c.bf16 %v1277_v31, %v1276_v27 }
 0x2bd   :  { %v730_v41 = vadd.f32 %v5134_v13, %v727_v38  ;;  %v2577_v38 = vld [vmem:[%s5780_s3 + $0xc8] sm:$0xff] }
 0x2be   :  { %v5390_v39 = vpack.c.bf16 %v2577_v38, %v2576_v34 }
 0x2bf   :  { %4629 = vtanh.f32 %v730_v41  ;;  %v2578_v41 = vld [vmem:[%s5780_s3 + $0xd0] sm:$0xff] }
 0x2c9   :  { %v5195_v43 = vpop.eup %4629 }
 0x2ca   :  { %3387 = vmatmul.mubr.f32.vlgmr.msra.gmra.mrb[14].mxu0 %v5195_v43 }
 0x2cb   :  { %4227 = vmatpush3.bf16.msra.mxu0 %v4762_v4  ;;  %3456 = vmatprep.mubr.msk.f32.mxu0 %vm4697_vm0, %v4698_v8 }
 0x2cc   :  { %4228 = vmatprep.subr.bf16.mxu0 %v4696_v3 }
 0x2cf   :  { %4230 = vmatpush3.bf16.msra.mxu0 %v4776_v9 }
 0x2d0   :  { %4231 = vmatprep.subr.bf16.mxu0 %v4696_v3 }
 0x2d3   :  { %4233 = vmatpush3.bf16.msra.mxu0 %v4798_v18 }
 0x2d4   :  { %4234 = vmatprep.subr.bf16.mxu0 %v4696_v3 }
 0x2d7   :  { %4236 = vmatpush3.bf16.msra.mxu0 %v4818_v25 }
 0x2d8   :  { %4237 = vmatprep.subr.bf16.mxu0 %v4696_v3 }
 0x2da   :  { %v816_v45 = vpop.f32.mrb[6].mxu1 }
 0x2db   :  { %v820_v4 = vadd.f32 %v816_v45, %v5085_v51  ;;  %v3353_v46 = vpop.f32.mrb[7].mxu1  ;;  %4239 = vmatpush3.bf16.msra.mxu0 %v4828_v29  ;;  %v2572_v51 = vld [vmem:[%s5780_s3 + $0xa0] sm:$0xff]  ;;  %v2579_v45 = vld [vmem:[%s5780_s3 + $0xd8] sm:$0xff] }
 0x2dc   :  { %4240 = vmatprep.subr.bf16.mxu0 %v4696_v3  ;;  %v5321_v60 = vpack.c.bf16 %v2573_v53, %v2572_v51  ;;  %v2580_v46 = vld [vmem:[%s5780_s3 + $0xe0] sm:$0xff]  ;;  %v1361_v51 = vld [vmem:[%s5781_s4 + $0x58] sm:$0xff] }
 0x2dd   :  { %4631 = vtanh.f32 %v820_v4  ;;  %v5400_v4 = vpack.c.bf16 %v2579_v45, %v2578_v41 }
 0x2df   :  { %4242 = vmatpush3.bf16.msra.mxu0 %v4852_v37 }
 0x2e0   :  { %4243 = vmatprep.subr.bf16.mxu0 %v4696_v3 }
 0x2e3   :  { %4245 = vmatpush3.bf16.msra.mxu0 %v4877_v44 }
 0x2e4   :  { %4246 = vmatprep.subr.bf16.mxu0 %v4696_v3 }
 0x2e7   :  { %v4632_v9 = vpop.eup %4631  ;;  %4248 = vmatpush3.bf16.msra.mxu0 %v4905_v52 }
 0x2e8   :  { %3422 = vmatmul.mubr.f32.vlgmr.msra.gmra.mrb[8].mxu1 %v4632_v9  ;;  %4273 = vmatprep.subr.bf16.mxu0 %v4696_v3 }
 0x2e9   :  { %4251 = vmatpush3.bf16.msra.mxu1 %v4846_v35  ;;  %3491 = vmatprep.mubr.msk.f32.mxu1 %vm4697_vm0, %v4698_v8 }
 0x2ea   :  { %3457 = vmatmul.mubr.f32.vlgmr.msra.gmra.mrb[16].mxu0 %v4632_v9  ;;  %4252 = vmatprep.subr.bf16.mxu1 %v4696_v3  ;;  %v2581_v9 = vld [vmem:[%s5780_s3 + $0xe8] sm:$0xff] }
 0x2eb   :  { %4275 = vmatpush3.bf16.msra.mxu0 %v4944_v63  ;;  %3526 = vmatprep.mubr.msk.f32.mxu0 %vm4697_vm0, %v4698_v8  ;;  %v1263_v63 = vld [vmem:[%s5780_s3 + $0x8] sm:$0xff] }
 0x2ec   :  { %4276 = vmatprep.subr.bf16.mxu0 %v4696_v3 }
 0x2ed   :  { %4254 = vmatpush3.bf16.msra.mxu1 %v4870_v42 }
 0x2ee   :  { %4255 = vmatprep.subr.bf16.mxu1 %v4696_v3 }
 0x2ef   :  { %4278 = vmatpush3.bf16.msra.mxu0 %v4966_v7  ;;  %v2569_v7 = vld [vmem:[%s5780_s3 + $0x88] sm:$0xff] }
 0x2f0   :  { %4279 = vmatprep.subr.bf16.mxu0 %v4696_v3 }
 0x2f1   :  { %4257 = vmatpush3.bf16.msra.mxu1 %v4898_v50 }
 0x2f2   :  { %4258 = vmatprep.subr.bf16.mxu1 %v4696_v3 }
 0x2f3   :  { %4281 = vmatpush3.bf16.msra.mxu0 %v4988_v15  ;;  %v1264_v15 = vld [vmem:[%s5780_s3 + $0x10] sm:$0xff] }
 0x2f4   :  { %4282 = vmatprep.subr.bf16.mxu0 %v4696_v3 }
 0x2f5   :  { %4260 = vmatpush3.bf16.msra.mxu1 %v4926_v58  ;;  %v1262_v58 = vld [vmem:[%s5780_s3] sm:$0xff] }
 0x2f6   :  { %4261 = vmatprep.subr.bf16.mxu1 %v4696_v3 }
 0x2f7   :  { %4284 = vmatpush3.bf16.msra.mxu0 %v5008_v22 }
 0x2f8   :  { %4285 = vmatprep.subr.bf16.mxu0 %v4696_v3 }
 0x2f9   :  { %4263 = vmatpush3.bf16.msra.mxu1 %v4954_v2  ;;  %v2568_v2 = vld [vmem:[%s5780_s3 + $0x80] sm:$0xff] }
 0x2fa   :  { %4264 = vmatprep.subr.bf16.mxu1 %v4696_v3 }
 0x2fb   :  { %4287 = vmatpush3.bf16.msra.mxu0 %v5046_v28 }
 0x2fc   :  { %4288 = vmatprep.subr.bf16.mxu0 %v4696_v3 }
 0x2fd   :  { %4266 = vmatpush3.bf16.msra.mxu1 %v4978_v12  ;;  %v5267_v12 = vpack.c.bf16 %v1263_v63, %v1262_v58  ;;  %v1354_v63 = vld [vmem:[%s5781_s4 + $0x20] sm:$0xff] }
 0x2fe   :  { %4267 = vmatprep.subr.bf16.mxu1 %v4696_v3 }
 0x2ff   :  { %4290 = vmatpush3.bf16.msra.mxu0 %v5056_v32  ;;  %v2570_v32 = vld [vmem:[%s5780_s3 + $0x90] sm:$0xff] }
 0x300   :  { %4291 = vmatprep.subr.bf16.mxu0 %v4696_v3 }
 0x301   :  { %4269 = vmatpush3.bf16.msra.mxu1 %v4998_v19  ;;  %v1265_v19 = vld [vmem:[%s5780_s3 + $0x18] sm:$0xff] }
 0x302   :  { %4270 = vmatprep.subr.bf16.mxu1 %v4696_v3 }
 0x303   :  { %4293 = vmatpush3.bf16.msra.mxu0 %v5066_v36  ;;  %v2571_v36 = vld [vmem:[%s5780_s3 + $0x98] sm:$0xff] }
 0x304   :  { %4294 = vmatprep.subr.bf16.mxu0 %v4696_v3  ;;  %v5299_v49 = vpack.c.bf16 %v2571_v36, %v2570_v32  ;;  %v1358_v32 = vld [vmem:[%s5781_s4 + $0x40] sm:$0xff]  ;;  %v1359_v36 = vld [vmem:[%s5781_s4 + $0x48] sm:$0xff] }
 0x305   :  { %4272 = vmatpush3.bf16.msra.mxu1 %v5012_v23  ;;  %v5277_v23 = vpack.c.bf16 %v2569_v7, %v2568_v2  ;;  %v1355_v2 = vld [vmem:[%s5781_s4 + $0x28] sm:$0xff] }
 0x306   :  { %4297 = vmatprep.subr.bf16.mxu1 %v4696_v3  ;;  %v5450_v7 = vpack.c.bf16 %v1355_v2, %v1354_v63 }
 0x307   :  { %4296 = vmatpush3.bf16.msra.mxu0 %v5075_v40  ;;  %v5287_v40 = vpack.c.bf16 %v1265_v19, %v1264_v15  ;;  %v1356_v15 = vld [vmem:[%s5781_s4 + $0x30] sm:$0xff]  ;;  %v1357_v19 = vld [vmem:[%s5781_s4 + $0x38] sm:$0xff] }
 0x308   :  { %4321 = vmatprep.subr.bf16.mxu0 %v4696_v3 }
 0x39d   :  { %v920_v18 = vpop.f32.mrb[14].mxu0 }
 0x39e   :  { %v3388_v25 = vpop.f32.mrb[15].mxu0 }
 0x39f   :  { %v2582_v25 = vld [vmem:[%s5780_s3 + $0xf0] sm:$0xff] }
 0x3bb   :  { %v990_v29 = vpop.f32.mrb[8].mxu1 }
 0x3bc   :  { %v991_v35 = vadd.f32 %v990_v29, %v920_v18  ;;  %v3423_v37 = vpop.f32.mrb[9].mxu1  ;;  %v5410_v18 = vpack.c.bf16 %v2581_v9, %v2580_v46  ;;  %v2583_v29 = vld [vmem:[%s5780_s3 + $0xf8] sm:$0xff] }
 0x3bd   :  { %v1080_v42 = vpop.f32.mrb[16].mxu0  ;;  %v1350_v37 = vld [vmem:[%s5781_s4] sm:$0xff] }
 0x3be   :  { %v994_v44 = vadd.f32 %v5134_v13, %v991_v35  ;;  %v1084_v50 = vadd.f32 %v1080_v42, %v5083_v48  ;;  %v3458_v52 = vpop.f32.mrb[17].mxu0  ;;  %v1267_v48 = vld [vmem:[%s5780_s3 + $0x28] sm:$0xff]  ;;  %v5420_v35 = vpack.c.bf16 %v2583_v29, %v2582_v25 }
 0x3bf   :  { %v5311_v55 = vpack.c.bf16 %v1267_v48, %v1266_v47  ;;  %v1351_v42 = vld [vmem:[%s5781_s4 + $0x8] sm:$0xff]  ;;  %v1353_v52 = vld [vmem:[%s5781_s4 + $0x18] sm:$0xff]  ;;  %v5470_v47 = vpack.c.bf16 %v1359_v36, %v1358_v32  ;;  %v1360_v48 = vld [vmem:[%s5781_s4 + $0x50] sm:$0xff] }
 0x3c0   :  { %4633 = vtanh.f32 %v994_v44  ;;  %v5429_v44 = vpack.c.bf16 %v1351_v42, %v1350_v37  ;;  %v5480_v53 = vpack.c.bf16 %v1361_v51, %v1360_v48 }
 0x3c1   :  { %4635 = vtanh.f32 %v1084_v50  ;;  %v1352_v50 = vld [vmem:[%s5781_s4 + $0x10] sm:$0xff] }
 0x3c2   :  { %v5440_v58 = vpack.c.bf16 %v1353_v52, %v1352_v50 }
 0x3ca   :  { %v5275_v22 = vpop.eup %4633 }
 0x3cb   :  { %v4636_v28 = vpop.eup %4635  ;;  %3492 = vmatmul.mubr.f32.vlgmr.msra.gmra.mrb[10].mxu1 %v5275_v22 }
 0x3cc   :  { %3527 = vmatmul.mubr.f32.vlgmr.msra.gmra.mrb[18].mxu0 %v4636_v28  ;;  %4299 = vmatpush3.bf16.msra.mxu1 %v5267_v12 }
 0x3cd   :  { %4300 = vmatprep.subr.bf16.mxu1 %v4696_v3  ;;  %3561 = vmatprep.mubr.msk.f32.mxu1 %vm4697_vm0, %v4698_v8 }
 0x3ce   :  { %4323 = vmatpush3.bf16.msra.mxu0 %v5277_v23  ;;  %3596 = vmatprep.mubr.msk.f32.mxu0 %vm4697_vm0, %v4698_v8 }
 0x3cf   :  { %4324 = vmatprep.subr.bf16.mxu0 %v4696_v3 }
 0x3d0   :  { %4302 = vmatpush3.bf16.msra.mxu1 %v5287_v40 }
 0x3d1   :  { %4303 = vmatprep.subr.bf16.mxu1 %v4696_v3 }
 0x3d2   :  { %4326 = vmatpush3.bf16.msra.mxu0 %v5299_v49 }
 0x3d3   :  { %4327 = vmatprep.subr.bf16.mxu0 %v4696_v3 }
 0x3d4   :  { %4305 = vmatpush3.bf16.msra.mxu1 %v5311_v55 }
 0x3d5   :  { %4306 = vmatprep.subr.bf16.mxu1 %v4696_v3 }
 0x3d6   :  { %4329 = vmatpush3.bf16.msra.mxu0 %v5321_v60 }
 0x3d7   :  { %4330 = vmatprep.subr.bf16.mxu0 %v4696_v3 }
 0x3d8   :  { %4308 = vmatpush3.bf16.msra.mxu1 %v5331_v1 }
 0x3d9   :  { %4309 = vmatprep.subr.bf16.mxu1 %v4696_v3 }
 0x3da   :  { %4332 = vmatpush3.bf16.msra.mxu0 %v5341_v11 }
 0x3db   :  { %4333 = vmatprep.subr.bf16.mxu0 %v4696_v3 }
 0x3dc   :  { %4311 = vmatpush3.bf16.msra.mxu1 %v5345_v14 }
 0x3dd   :  { %4312 = vmatprep.subr.bf16.mxu1 %v4696_v3 }
 0x3de   :  { %4335 = vmatpush3.bf16.msra.mxu0 %v5390_v39 }
 0x3df   :  { %4336 = vmatprep.subr.bf16.mxu0 %v4696_v3 }
 0x3e0   :  { %4314 = vmatpush3.bf16.msra.mxu1 %v5357_v20 }
 0x3e1   :  { %4315 = vmatprep.subr.bf16.mxu1 %v4696_v3 }
 0x3e2   :  { %4338 = vmatpush3.bf16.msra.mxu0 %v5400_v4 }
 0x3e3   :  { %4339 = vmatprep.subr.bf16.mxu0 %v4696_v3 }
 0x3e4   :  { %4317 = vmatpush3.bf16.msra.mxu1 %v5367_v26 }
 0x3e5   :  { %4318 = vmatprep.subr.bf16.mxu1 %v4696_v3 }
 0x3e6   :  { %4341 = vmatpush3.bf16.msra.mxu0 %v5410_v18 }
 0x3e7   :  { %4342 = vmatprep.subr.bf16.mxu0 %v4696_v3 }
 0x3e8   :  { %4320 = vmatpush3.bf16.msra.mxu1 %v5377_v33 }
 0x3e9   :  { %4345 = vmatprep.subr.bf16.mxu1 %v4696_v3 }
 0x3ea   :  { %4344 = vmatpush3.bf16.msra.mxu0 %v5420_v35 }
 0x3eb   :  { %3562 = vmatmul.mubr.f32.vlgmr.msra.gmra.mrb[12].mxu1 %v4636_v28  ;;  %4369 = vmatprep.subr.bf16.mxu0 %v4696_v3  ;;  %v5460_v28 = vpack.c.bf16 %v1357_v19, %v1356_v15 }
 0x3ec   :  { %3631 = vmatprep.mubr.msk.f32.mxu1 %vm4697_vm0, %v4698_v8  ;;  %4347 = vmatpush3.bf16.msra.mxu1 %v5429_v44 }
 0x3ed   :  { %4348 = vmatprep.subr.bf16.mxu1 %v4696_v3 }
 0x3f0   :  { %4350 = vmatpush3.bf16.msra.mxu1 %v5440_v58 }
 0x3f1   :  { %4351 = vmatprep.subr.bf16.mxu1 %v4696_v3 }
 0x3f4   :  { %4353 = vmatpush3.bf16.msra.mxu1 %v5450_v7 }
 0x3f5   :  { %4354 = vmatprep.subr.bf16.mxu1 %v4696_v3 }
 0x3f8   :  { %4356 = vmatpush3.bf16.msra.mxu1 %v5460_v28 }
 0x3f9   :  { %4357 = vmatprep.subr.bf16.mxu1 %v4696_v3 }
 0x3fc   :  { %4359 = vmatpush3.bf16.msra.mxu1 %v5470_v47 }
 0x3fd   :  { %4360 = vmatprep.subr.bf16.mxu1 %v4696_v3 }
 0x400   :  { %4362 = vmatpush3.bf16.msra.mxu1 %v5480_v53 }
 0x401   :  { %4363 = vmatprep.subr.bf16.mxu1 %v4696_v3 }
 0x404   :  { %4365 = vmatpush3.bf16.msra.mxu1 %v5490_v62 }
 0x405   :  { %4366 = vmatprep.subr.bf16.mxu1 %v4696_v3 }
 0x408   :  { %4368 = vmatpush3.bf16.msra.mxu1 %v5500_v10 }
 0x409   :  { %4393 = vmatprep.subr.bf16.mxu1 %v4696_v3 }
 0x49e   :  { %v1184_v16 = vpop.f32.mrb[10].mxu1 }
 0x49f   :  { %v1254_v17 = vpop.f32.mrb[18].mxu0  ;;  %v3493_v21 = vpop.f32.mrb[11].mxu1 }
 0x4a0   :  { %v1255_v24 = vadd.f32 %v1254_v17, %v1184_v16  ;;  %v3528_v27 = vpop.f32.mrb[19].mxu0  ;;  %v2348_v17 = vld [vmem:[%s5783_s6 + $0x60] sm:$0xff]  ;;  %v2349_v21 = vld [vmem:[%s5783_s6 + $0x68] sm:$0xff] }
 0x4a1   :  { %v2350_v27 = vld [vmem:[%s5783_s6 + $0x70] sm:$0xff] }
 0x4a2   :  { %v1258_v31 = vadd.f32 %v5134_v13, %v1255_v24  ;;  %v4609_v24 = vpack.c.bf16 %v2349_v21, %v2348_v17 }
 0x4a4   :  { %4637 = vtanh.f32 %v1258_v31  ;;  %v2351_v31 = vld [vmem:[%s5783_s6 + $0x78] sm:$0xff] }
 0x4ae   :  { %v5505_v34 = vpop.eup %4637 }
 0x4af   :  { %3597 = vmatmul.mubr.f32.vlgmr.msra.gmra.mrb[20].mxu0 %v5505_v34 }
 0x4b0   :  { %4371 = vmatpush3.bf16.msra.mxu0 %v5267_v12  ;;  %3666 = vmatprep.mubr.msk.f32.mxu0 %vm4697_vm0, %v4698_v8 }
 0x4b1   :  { %4372 = vmatprep.subr.bf16.mxu0 %v4696_v3 }
 0x4b4   :  { %4374 = vmatpush3.bf16.msra.mxu0 %v5287_v40 }
 0x4b5   :  { %4375 = vmatprep.subr.bf16.mxu0 %v4696_v3 }
 0x4b8   :  { %4377 = vmatpush3.bf16.msra.mxu0 %v5311_v55 }
 0x4b9   :  { %4378 = vmatprep.subr.bf16.mxu0 %v4696_v3 }
 0x4bc   :  { %4380 = vmatpush3.bf16.msra.mxu0 %v5331_v1 }
 0x4bd   :  { %4381 = vmatprep.subr.bf16.mxu0 %v4696_v3 }
 0x4be   :  { %v1344_v38 = vpop.f32.mrb[12].mxu1 }
 0x4bf   :  { %v1348_v41 = vadd.f32 %v1344_v38, %v5089_v57  ;;  %v3563_v45 = vpop.f32.mrb[13].mxu1  ;;  %v4613_v38 = vpack.c.bf16 %v2351_v31, %v2350_v27 }
 0x4c0   :  { %4383 = vmatpush3.bf16.msra.mxu0 %v5345_v14 }
 0x4c1   :  { %4639 = vtanh.f32 %v1348_v41  ;;  %4384 = vmatprep.subr.bf16.mxu0 %v4696_v3 }
 0x4c4   :  { %4386 = vmatpush3.bf16.msra.mxu0 %v5357_v20 }
 0x4c5   :  { %4387 = vmatprep.subr.bf16.mxu0 %v4696_v3 }
 0x4c8   :  { %4389 = vmatpush3.bf16.msra.mxu0 %v5367_v26 }
 0x4c9   :  { %4390 = vmatprep.subr.bf16.mxu0 %v4696_v3 }
 0x4cb   :  { %v4640_v46 = vpop.eup %4639 }
 0x4cc   :  { %4392 = vmatpush3.bf16.msra.mxu0 %v5377_v33  ;;  %3632 = vmatmul.mubr.f32.vlgmr.msra.gmra.mrb[14].mxu1 %v4640_v46 }
 0x4cd   :  { %4395 = vmatpush3.bf16.msra.mxu1 %v5277_v23  ;;  %4417 = vmatprep.subr.bf16.mxu0 %v4696_v3 }
 0x4ce   :  { %4396 = vmatprep.subr.bf16.mxu1 %v4696_v3  ;;  %3701 = vmatprep.mubr.msk.f32.mxu1 %vm4697_vm0, %v4698_v8 }
 0x4cf   :  { %3667 = vmatmul.mubr.f32.vlgmr.msra.gmra.mrb[22].mxu0 %v4640_v46 }
 0x4d0   :  { %4419 = vmatpush3.bf16.msra.mxu0 %v5429_v44  ;;  %3736 = vmatprep.mubr.msk.f32.mxu0 %vm4697_vm0, %v4698_v8 }
 0x4d1   :  { %4398 = vmatpush3.bf16.msra.mxu1 %v5299_v49  ;;  %4420 = vmatprep.subr.bf16.mxu0 %v4696_v3 }
 0x4d2   :  { %4399 = vmatprep.subr.bf16.mxu1 %v4696_v3 }
 0x4d4   :  { %4422 = vmatpush3.bf16.msra.mxu0 %v5440_v58 }
 0x4d5   :  { %4401 = vmatpush3.bf16.msra.mxu1 %v5321_v60  ;;  %4423 = vmatprep.subr.bf16.mxu0 %v4696_v3 }
 0x4d6   :  { %4402 = vmatprep.subr.bf16.mxu1 %v4696_v3 }
 0x4d8   :  { %4425 = vmatpush3.bf16.msra.mxu0 %v5450_v7 }
 0x4d9   :  { %4404 = vmatpush3.bf16.msra.mxu1 %v5341_v11  ;;  %4426 = vmatprep.subr.bf16.mxu0 %v4696_v3 }
 0x4da   :  { %4405 = vmatprep.subr.bf16.mxu1 %v4696_v3 }
 0x4dc   :  { %4428 = vmatpush3.bf16.msra.mxu0 %v5460_v28 }
 0x4dd   :  { %4407 = vmatpush3.bf16.msra.mxu1 %v5390_v39  ;;  %4429 = vmatprep.subr.bf16.mxu0 %v4696_v3 }
 0x4de   :  { %4408 = vmatprep.subr.bf16.mxu1 %v4696_v3 }
 0x4e0   :  { %4431 = vmatpush3.bf16.msra.mxu0 %v5470_v47 }
 0x4e1   :  { %4410 = vmatpush3.bf16.msra.mxu1 %v5400_v4  ;;  %4432 = vmatprep.subr.bf16.mxu0 %v4696_v3 }
 0x4e2   :  { %4411 = vmatprep.subr.bf16.mxu1 %v4696_v3 }
 0x4e4   :  { %4434 = vmatpush3.bf16.msra.mxu0 %v5480_v53 }
 0x4e5   :  { %4413 = vmatpush3.bf16.msra.mxu1 %v5410_v18  ;;  %4435 = vmatprep.subr.bf16.mxu0 %v4696_v3 }
 0x4e6   :  { %4414 = vmatprep.subr.bf16.mxu1 %v4696_v3 }
 0x4e8   :  { %4437 = vmatpush3.bf16.msra.mxu0 %v5490_v62 }
 0x4e9   :  { %4416 = vmatpush3.bf16.msra.mxu1 %v5420_v35  ;;  %4438 = vmatprep.subr.bf16.mxu0 %v4696_v3 }
 0x4ea   :  { %4441 = vmatprep.subr.bf16.mxu1 %v4696_v3 }
 0x4ec   :  { %4440 = vmatpush3.bf16.msra.mxu0 %v5500_v10 }
 0x4ed   :  { %4465 = vmatprep.subr.bf16.mxu0 %v4696_v3 }
 0x582   :  { %v1448_v57 = vpop.f32.mrb[20].mxu0 }
 0x583   :  { %v3598_v9 = vpop.f32.mrb[21].mxu0 }
 0x59f   :  { %v1518_v25 = vpop.f32.mrb[14].mxu1 }
 0x5a0   :  { %v1519_v29 = vadd.f32 %v1518_v25, %v1448_v57  ;;  %v3633_v37 = vpop.f32.mrb[15].mxu1 }
 0x5a2   :  { %v1522_v42 = vadd.f32 %v5134_v13, %v1519_v29  ;;  %v1608_v50 = vpop.f32.mrb[22].mxu0 }
 0x5a3   :  { %v1612_v52 = vadd.f32 %v1608_v50, %v5087_v54  ;;  %v3668_v63 = vpop.f32.mrb[23].mxu0 }
 0x5a4   :  { %4641 = vtanh.f32 %v1522_v42  ;;  %v4671_v42 = vld [vmem:[%s5782_s5 + $0x1] ss:$0 sm:$0xff] }
 0x5a5   :  { %4643 = vtanh.f32 %v1612_v52 }
 0x5ae   :  { %v5565_v2 = vpop.eup %4641 }
 0x5af   :  { %v4644_v15 = vpop.eup %4643  ;;  %3702 = vmatmul.mubr.f32.vlgmr.msra.gmra.mrb[16].mxu1 %v5565_v2 }
 0x5b0   :  { %3737 = vmatmul.mubr.f32.vlgmr.msra.gmra.mrb[24].mxu0 %v4644_v15  ;;  %4443 = vmatpush3.bf16.msra.mxu1 %v5267_v12 }
 0x5b1   :  { %4444 = vmatprep.subr.bf16.mxu1 %v4696_v3  ;;  %3771 = vmatprep.mubr.msk.f32.mxu1 %vm4697_vm0, %v4698_v8 }
 0x5b2   :  { %4467 = vmatpush3.bf16.msra.mxu0 %v5277_v23  ;;  %3806 = vmatprep.mubr.msk.f32.mxu0 %vm4697_vm0, %v4698_v8 }
 0x5b3   :  { %4468 = vmatprep.subr.bf16.mxu0 %v4696_v3 }
 0x5b4   :  { %4446 = vmatpush3.bf16.msra.mxu1 %v5287_v40 }
 0x5b5   :  { %4447 = vmatprep.subr.bf16.mxu1 %v4696_v3 }
 0x5b6   :  { %4470 = vmatpush3.bf16.msra.mxu0 %v5299_v49 }
 0x5b7   :  { %4471 = vmatprep.subr.bf16.mxu0 %v4696_v3 }
 0x5b8   :  { %4449 = vmatpush3.bf16.msra.mxu1 %v5311_v55 }
 0x5b9   :  { %4450 = vmatprep.subr.bf16.mxu1 %v4696_v3 }
 0x5ba   :  { %4473 = vmatpush3.bf16.msra.mxu0 %v5321_v60 }
 0x5bb   :  { %4474 = vmatprep.subr.bf16.mxu0 %v4696_v3 }
 0x5bc   :  { %4452 = vmatpush3.bf16.msra.mxu1 %v5331_v1 }
 0x5bd   :  { %4453 = vmatprep.subr.bf16.mxu1 %v4696_v3 }
 0x5be   :  { %4476 = vmatpush3.bf16.msra.mxu0 %v5341_v11 }
 0x5bf   :  { %4477 = vmatprep.subr.bf16.mxu0 %v4696_v3 }
 0x5c0   :  { %4455 = vmatpush3.bf16.msra.mxu1 %v5345_v14 }
 0x5c1   :  { %4456 = vmatprep.subr.bf16.mxu1 %v4696_v3 }
 0x5c2   :  { %4479 = vmatpush3.bf16.msra.mxu0 %v5390_v39 }
 0x5c3   :  { %4480 = vmatprep.subr.bf16.mxu0 %v4696_v3 }
 0x5c4   :  { %4458 = vmatpush3.bf16.msra.mxu1 %v5357_v20 }
 0x5c5   :  { %4459 = vmatprep.subr.bf16.mxu1 %v4696_v3 }
 0x5c6   :  { %4482 = vmatpush3.bf16.msra.mxu0 %v5400_v4 }
 0x5c7   :  { %4483 = vmatprep.subr.bf16.mxu0 %v4696_v3 }
 0x5c8   :  { %4461 = vmatpush3.bf16.msra.mxu1 %v5367_v26 }
 0x5c9   :  { %4462 = vmatprep.subr.bf16.mxu1 %v4696_v3 }
 0x5ca   :  { %4485 = vmatpush3.bf16.msra.mxu0 %v5410_v18 }
 0x5cb   :  { %4486 = vmatprep.subr.bf16.mxu0 %v4696_v3 }
 0x5cc   :  { %4464 = vmatpush3.bf16.msra.mxu1 %v5377_v33 }
 0x5cd   :  { %4489 = vmatprep.subr.bf16.mxu1 %v4696_v3 }
 0x5ce   :  { %4488 = vmatpush3.bf16.msra.mxu0 %v5420_v35 }
 0x5cf   :  { %3772 = vmatmul.mubr.f32.vlgmr.msra.gmra.mrb[18].mxu1 %v4644_v15  ;;  %4513 = vmatprep.subr.bf16.mxu0 %v4696_v3 }
 0x5d0   :  { %4491 = vmatpush3.bf16.msra.mxu1 %v5429_v44  ;;  %3841 = vmatprep.mubr.msk.f32.mxu1 %vm4697_vm0, %v4698_v8 }
 0x5d1   :  { %4492 = vmatprep.subr.bf16.mxu1 %v4696_v3 }
 0x5d4   :  { %4494 = vmatpush3.bf16.msra.mxu1 %v5440_v58 }
 0x5d5   :  { %4495 = vmatprep.subr.bf16.mxu1 %v4696_v3 }
 0x5d8   :  { %4497 = vmatpush3.bf16.msra.mxu1 %v5450_v7 }
 0x5d9   :  { %4498 = vmatprep.subr.bf16.mxu1 %v4696_v3 }
 0x5dc   :  { %4500 = vmatpush3.bf16.msra.mxu1 %v5460_v28 }
 0x5dd   :  { %4501 = vmatprep.subr.bf16.mxu1 %v4696_v3 }
 0x5e0   :  { %4503 = vmatpush3.bf16.msra.mxu1 %v5470_v47 }
 0x5e1   :  { %4504 = vmatprep.subr.bf16.mxu1 %v4696_v3 }
 0x5e4   :  { %4506 = vmatpush3.bf16.msra.mxu1 %v5480_v53 }
 0x5e5   :  { %4507 = vmatprep.subr.bf16.mxu1 %v4696_v3 }
 0x5e8   :  { %4509 = vmatpush3.bf16.msra.mxu1 %v5490_v62 }
 0x5e9   :  { %4510 = vmatprep.subr.bf16.mxu1 %v4696_v3 }
 0x5ec   :  { %4512 = vmatpush3.bf16.msra.mxu1 %v5500_v10 }
 0x5ed   :  { %4537 = vmatprep.subr.bf16.mxu1 %v4696_v3 }
 0x682   :  { %v1712_v54 = vpop.f32.mrb[16].mxu1 }
 0x683   :  { %v1782_v19 = vpop.f32.mrb[24].mxu0  ;;  %v3703_v32 = vpop.f32.mrb[17].mxu1 }
 0x684   :  { %v1783_v36 = vadd.f32 %v1782_v19, %v1712_v54  ;;  %v3738_v48 = vpop.f32.mrb[25].mxu0 }
 0x686   :  { %v1786_v51 = vadd.f32 %v5134_v13, %v1783_v36 }
 0x688   :  { %4645 = vtanh.f32 %v1786_v51 }
 0x692   :  { %v5623_v56 = vpop.eup %4645 }
 0x693   :  { %3807 = vmatmul.mubr.f32.vlgmr.msra.gmra.mrb[26].mxu0 %v5623_v56 }
 0x694   :  { %4515 = vmatpush3.bf16.msra.mxu0 %v5267_v12  ;;  %3876 = vmatprep.mubr.msk.f32.mxu0 %vm4697_vm0, %v4698_v8 }
 0x695   :  { %4516 = vmatprep.subr.bf16.mxu0 %v4696_v3 }
 0x698   :  { %4518 = vmatpush3.bf16.msra.mxu0 %v5287_v40 }
 0x699   :  { %4519 = vmatprep.subr.bf16.mxu0 %v4696_v3 }
 0x69c   :  { %4521 = vmatpush3.bf16.msra.mxu0 %v5311_v55 }
 0x69d   :  { %4522 = vmatprep.subr.bf16.mxu0 %v4696_v3 }
 0x6a0   :  { %4524 = vmatpush3.bf16.msra.mxu0 %v5331_v1 }
 0x6a1   :  { %4525 = vmatprep.subr.bf16.mxu0 %v4696_v3 }
 0x6a2   :  { %v1872_v59 = vpop.f32.mrb[18].mxu1 }
 0x6a3   :  { %v1876_v12 = vadd.f32 %v1872_v59, %v5093_v5  ;;  %v3773_v0 = vpop.f32.mrb[19].mxu1  ;;  %v2337_v5 = vld [vmem:[%s5783_s6 + $0x8] sm:$0xff] }
 0x6a4   :  { %4527 = vmatpush3.bf16.msra.mxu0 %v5345_v14 }
 0x6a5   :  { %4647 = vtanh.f32 %v1876_v12  ;;  %4528 = vmatprep.subr.bf16.mxu0 %v4696_v3 }
 0x6a8   :  { %4530 = vmatpush3.bf16.msra.mxu0 %v5357_v20 }
 0x6a9   :  { %4531 = vmatprep.subr.bf16.mxu0 %v4696_v3 }
 0x6ac   :  { %4533 = vmatpush3.bf16.msra.mxu0 %v5367_v26 }
 0x6ad   :  { %4534 = vmatprep.subr.bf16.mxu0 %v4696_v3 }
 0x6af   :  { %v4648_v40 = vpop.eup %4647 }
 0x6b0   :  { %4536 = vmatpush3.bf16.msra.mxu0 %v5377_v33  ;;  %3842 = vmatmul.mubr.f32.vlgmr.msra.gmra.mrb[20].mxu1 %v4648_v40  ;;  %v2338_v33 = vld [vmem:[%s5783_s6 + $0x10] sm:$0xff] }
 0x6b1   :  { %4539 = vmatpush3.bf16.msra.mxu1 %v5277_v23  ;;  %4561 = vmatprep.subr.bf16.mxu0 %v4696_v3 }
 0x6b2   :  { %4540 = vmatprep.subr.bf16.mxu1 %v4696_v3  ;;  %3911 = vmatprep.mubr.msk.f32.mxu1 %vm4697_vm0, %v4698_v8 }
 0x6b3   :  { %3877 = vmatmul.mubr.f32.vlgmr.msra.gmra.mrb[28].mxu0 %v4648_v40 }
 0x6b4   :  { %4563 = vmatpush3.bf16.msra.mxu0 %v5429_v44  ;;  %3946 = vmatprep.mubr.msk.f32.mxu0 %vm4697_vm0, %v4698_v8  ;;  %v2336_v8 = vld [vmem:[%s5783_s6] sm:$0xff] }
 0x6b5   :  { %4542 = vmatpush3.bf16.msra.mxu1 %v5299_v49  ;;  %4564 = vmatprep.subr.bf16.mxu0 %v4696_v3  ;;  %v4585_v23 = vpack.c.bf16 %v2337_v5, %v2336_v8 }
 0x6b6   :  { %4543 = vmatprep.subr.bf16.mxu1 %v4696_v3 }
 0x6b8   :  { %4566 = vmatpush3.bf16.msra.mxu0 %v5440_v58  ;;  %v2342_v58 = vld [vmem:[%s5783_s6 + $0x30] sm:$0xff] }
 0x6b9   :  { %4545 = vmatpush3.bf16.msra.mxu1 %v5321_v60  ;;  %4567 = vmatprep.subr.bf16.mxu0 %v4696_v3 }
 0x6ba   :  { %4546 = vmatprep.subr.bf16.mxu1 %v4696_v3 }
 0x6bc   :  { %4569 = vmatpush3.bf16.msra.mxu0 %v5450_v7  ;;  %v2343_v7 = vld [vmem:[%s5783_s6 + $0x38] sm:$0xff] }
 0x6bd   :  { %4548 = vmatpush3.bf16.msra.mxu1 %v5341_v11  ;;  %4570 = vmatprep.subr.bf16.mxu0 %v4696_v3 }
 0x6be   :  { %4549 = vmatprep.subr.bf16.mxu1 %v4696_v3 }
 0x6c0   :  { %4572 = vmatpush3.bf16.msra.mxu0 %v5460_v28  ;;  %v4597_v28 = vpack.c.bf16 %v2343_v7, %v2342_v58 }
 0x6c1   :  { %4551 = vmatpush3.bf16.msra.mxu1 %v5390_v39  ;;  %4573 = vmatprep.subr.bf16.mxu0 %v4696_v3  ;;  %v2339_v39 = vld [vmem:[%s5783_s6 + $0x18] sm:$0xff] }
 0x6c2   :  { %4552 = vmatprep.subr.bf16.mxu1 %v4696_v3 }
 0x6c4   :  { %4575 = vmatpush3.bf16.msra.mxu0 %v5470_v47  ;;  %v2344_v47 = vld [vmem:[%s5783_s6 + $0x40] sm:$0xff] }
 0x6c5   :  { %4554 = vmatpush3.bf16.msra.mxu1 %v5400_v4  ;;  %4576 = vmatprep.subr.bf16.mxu0 %v4696_v3  ;;  %v4589_v4 = vpack.c.bf16 %v2339_v39, %v2338_v33 }
 0x6c6   :  { %4555 = vmatprep.subr.bf16.mxu1 %v4696_v3 }
 0x6c8   :  { %4578 = vmatpush3.bf16.msra.mxu0 %v5480_v53  ;;  %v2345_v53 = vld [vmem:[%s5783_s6 + $0x48] sm:$0xff] }
 0x6c9   :  { %4557 = vmatpush3.bf16.msra.mxu1 %v5410_v18  ;;  %4579 = vmatprep.subr.bf16.mxu0 %v4696_v3 }
 0x6ca   :  { %4558 = vmatprep.subr.bf16.mxu1 %v4696_v3 }
 0x6cc   :  { %4581 = vmatpush3.bf16.msra.mxu0 %v5490_v62  ;;  %v4601_v62 = vpack.c.bf16 %v2345_v53, %v2344_v47 }
 0x6cd   :  { %4560 = vmatpush3.bf16.msra.mxu1 %v5420_v35  ;;  %4582 = vmatprep.subr.bf16.mxu0 %v4696_v3 }
 0x6ce   :  { %4586 = vmatprep.subr.bf16.mxu1 %v4585_v23 }
 0x6d0   :  { %4584 = vmatpush3.bf16.msra.mxu0 %v5500_v10  ;;  %v2347_v10 = vld [vmem:[%s5783_s6 + $0x58] sm:$0xff] }
 0x6d1   :  { %v4605_v16 = vpack.c.bf16 %v2347_v10, %v2346_v6 }
 0x766   :  { %v1976_v49 = vpop.f32.mrb[26].mxu0 }
 0x767   :  { %v3808_v55 = vpop.f32.mrb[27].mxu0 }
 0x783   :  { %v2046_v60 = vpop.f32.mrb[20].mxu1 }
 0x784   :  { %v2047_v1 = vadd.f32 %v2046_v60, %v1976_v49  ;;  %v3843_v11 = vpop.f32.mrb[21].mxu1 }
 0x786   :  { %v2050_v14 = vadd.f32 %v5134_v13, %v2047_v1  ;;  %v2136_v3 = vpop.f32.mrb[28].mxu0  ;;  %v2340_v13 = vld [vmem:[%s5783_s6 + $0x20] sm:$0xff] }
 0x787   :  { %v2140_v20 = vadd.f32 %v2136_v3, %v5091_v61  ;;  %v3878_v26 = vpop.f32.mrb[29].mxu0  ;;  %v2341_v61 = vld [vmem:[%s5783_s6 + $0x28] sm:$0xff] }
 0x788   :  { %4649 = vtanh.f32 %v2050_v14  ;;  %v4593_v44 = vpack.c.bf16 %v2341_v61, %v2340_v13 }
 0x789   :  { %4651 = vtanh.f32 %v2140_v20 }
 0x78a   :  { %4653 = vtanh.f32 %v5137_v30 }
 0x78b   :  { %4655 = vtanh.f32 %v5195_v43 }
 0x78c   :  { %4657 = vtanh.f32 %v5275_v22 }
 0x78d   :  { %4659 = vtanh.f32 %v5505_v34 }
 0x78e   :  { %4661 = vtanh.f32 %v5565_v2  ;;  %v2632_v2 = vld [vmem:[%s5784_s7] ss:$0 sm:$0xff] }
 0x78f   :  { %4663 = vtanh.f32 %v5623_v56 }
 0x792   :  { %v4650_v18 = vpop.eup %4649 }
 0x793   :  { %v4652_v35 = vpop.eup %4651  ;;  %3912 = vmatmul.mubr.f32.vlgmr.msra.gmra.mrb[22].mxu1 %v4650_v18  ;;  %4665 = vtanh.f32 %v4650_v18 }
 0x794   :  { %v4654_v30 = vpop.eup %4653  ;;  %2317 = vst [vmem:[#allocation4] sm:$0xff] %v4652_v35  ;;  %3947 = vmatmul.mubr.f32.vlgmr.msra.gmra.mrb[30].mxu0 %v4652_v35  ;;  %4588 = vmatpush3.bf16.msra.mxu1 %v4585_v23 }
 0x795   :  { %3981 = vmatprep.mubr.f32.mxu1 %v4654_v30  ;;  %4590 = vmatprep.subr.bf16.mxu1 %v4589_v4  ;;  %v4656_v41 = vpop.eup %4655 }
 0x796   :  { %v4658_v45 = vpop.eup %4657 }
 0x797   :  { %v4660_v43 = vpop.eup %4659 }
 0x798   :  { %4592 = vmatpush3.bf16.msra.mxu1 %v4589_v4  ;;  %v4662_v46 = vpop.eup %4661 }
 0x799   :  { %4594 = vmatprep.subr.bf16.mxu1 %v4593_v44  ;;  %v4664_v22 = vpop.eup %4663 }
 0x79c   :  { %4596 = vmatpush3.bf16.msra.mxu1 %v4593_v44 }
 0x79d   :  { %4598 = vmatprep.subr.bf16.mxu1 %v4597_v28  ;;  %v4666_v57 = vpop.eup %4665 }
 0x7a0   :  { %4600 = vmatpush3.bf16.msra.mxu1 %v4597_v28 }
 0x7a1   :  { %4602 = vmatprep.subr.bf16.mxu1 %v4601_v62 }
 0x7a4   :  { %4604 = vmatpush3.bf16.msra.mxu1 %v4601_v62 }
 0x7a5   :  { %4606 = vmatprep.subr.bf16.mxu1 %v4605_v16 }
 0x7a8   :  { %4608 = vmatpush3.bf16.msra.mxu1 %v4605_v16 }
 0x7a9   :  { %4610 = vmatprep.subr.bf16.mxu1 %v4609_v24 }
 0x7ac   :  { %4612 = vmatpush3.bf16.msra.mxu1 %v4609_v24 }
 0x7ad   :  { %4614 = vmatprep.subr.bf16.mxu1 %v4613_v38 }
 0x7b0   :  { %4616 = vmatpush3.bf16.msra.mxu1 %v4613_v38 }
 0x7b3   :  { %3982 = vmatmul.mubr.f32.vlgmr.msra.gmra.mrb[24].mxu1 %v4656_v41 }
 0x7b4   :  { %3984 = vmatprep.mubr.f32.mxu1 %v4658_v45 }
 0x7b7   :  { %3985 = vmatmul.mubr.f32.gmra.mrb[26].mxu1 %v4660_v43 }
 0x7b8   :  { %3987 = vmatprep.mubr.f32.mxu1 %v4662_v46 }
 0x7bb   :  { %3988 = vmatmul.mubr.f32.gmra.mrb[28].mxu1 %v4664_v22 }
 0x7bc   :  { %3990 = vmatprep.mubr.f32.mxu1 %v4666_v57 }
 0x866   :  { %v2240_v34 = vpop.f32.mrb[22].mxu1 }
 0x867   :  { %v2310_v9 = vpop.f32.mrb[30].mxu0  ;;  %v3913_v25 = vpop.f32.mrb[23].mxu1 }
 0x868   :  { %v2311_v29 = vadd.f32 %v2310_v9, %v2240_v34  ;;  %v3948_v37 = vpop.f32.mrb[31].mxu0 }
 0x86a   :  { %v2314_v50 = vadd.f32 %v4671_v42, %v2311_v29 }
 0x86c   :  { %4667 = vtanh.f32 %v2314_v50 }
 0x876   :  { %v4668_v52 = vpop.eup %4667 }
 0x877   :  { %4669 = vtanh.f32 %v4668_v52  ;;  %2319 = vst [vmem:[#allocation4 + $0x8] sm:$0xff] %v4668_v52 }
 0x881   :  { %v4670_v63 = vpop.eup %4669 }
 0x882   :  { %3991 = vmatmul.mubr.f32.gmra.mrb[30].mxu1 %v4670_v63 }
 0x886   :  { %v3983_v15 = vpop.f32.mrb[24].mxu1 }
 0x887   :  { %v2431_v54 = vadd.f32 %v3983_v15, %v2632_v2  ;;  %v2425_v19 = vpop.f32.mrb[25].mxu1 }
 0x888   :  { %v2426_v32 = vadd.f32 %v2632_v2, %v2425_v19 }
 0x889   :  { %2465 = vst [vmem:[%s5785_s8 + $0x8] sm:$0xff] %v2431_v54 }
 0x88a   :  { %2464 = vst [vmem:[%s5785_s8] sm:$0xff] %v2426_v32  ;;  %v3986_v36 = vpop.f32.mrb[26].mxu1 }
 0x88b   :  { %v2441_v48 = vadd.f32 %v3986_v36, %v2632_v2  ;;  %v2435_v51 = vpop.f32.mrb[27].mxu1 }
 0x88c   :  { %v2436_v56 = vadd.f32 %v2632_v2, %v2435_v51 }
 0x88d   :  { %2467 = vst [vmem:[%s5785_s8 + $0x18] sm:$0xff] %v2441_v48 }
 0x88e   :  { %2466 = vst [vmem:[%s5785_s8 + $0x10] sm:$0xff] %v2436_v56  ;;  %v3989_v59 = vpop.f32.mrb[28].mxu1 }
 0x88f   :  { %v2451_v12 = vadd.f32 %v3989_v59, %v2632_v2  ;;  %v2445_v0 = vpop.f32.mrb[29].mxu1 }
 0x890   :  { %v2446_v40 = vadd.f32 %v2632_v2, %v2445_v0 }
 0x891   :  { %2469 = vst [vmem:[%s5785_s8 + $0x28] sm:$0xff] %v2451_v12 }
 0x892   :  { %2468 = vst [vmem:[%s5785_s8 + $0x20] sm:$0xff] %v2446_v40 }
 0x893   :  { %4683 = shalt.err (!%p4680_p4)
}
 0x894   :  { %s4684_s28 = scalar_lea.hbm %s5786_s9, 256 }
 0x895   :  { %p4685_p5 = scmp.ne.s32.totalorder %s5786_s9, %s4684_s28  ;;  %p4688_p6 = scmp.lt.u32.totalorder %s4684_s28, %s5786_s9 }
 0x897   :  { %p4690_p7 = pnand %p4688_p6, %p4685_p5 }
 0x899   :  { %4693 = shalt.err (!%p4690_p7)
}
 0x89a   :  { %s4700_s11 = smov 128   ;;  %s4701_s0 = smov 8  }
 0x89b   :  { %2485 = dma.vmem_to_hbm [thread:$0]  %s2480_s2, 256, %s5786_s9, [#allocation5], %s4700_s11, %s4700_s11, %s4701_s0  }
 0x955   :  { %v3992_v8 = vpop.f32.mrb[30].mxu1 }
 0x956   :  { %v2461_v5 = vadd.f32 %v3992_v8, %v2632_v2  ;;  %v2455_v23 = vpop.f32.mrb[31].mxu1 }
 0x957   :  { %v2456_v49 = vadd.f32 %v2632_v2, %v2455_v23 }
 0x958   :  { %2471 = vst [vmem:[%s5785_s8 + $0x38] sm:$0xff] %v2461_v5 }
 0x959   :  { %2470 = vst [vmem:[%s5785_s8 + $0x30] sm:$0xff] %v2456_v49 }
 0x95a   :  { %4694 = dma.done.wait [#allocation5], 256  }
 0x95b   :  { %4695 = vsyncadd [#allocation5], 4294967040 }
 0x95c   :  { %2491 = vsyncpa [#allocation5], 1 }

</bundles_post_ra>
